<compile_context>
chip_gen: v6e
topology: v6e:2x2x1
jax: 0.10.0
libtpu: 0.0.40
codegen_flags: <defaults>
</compile_context>

<pallas_src>
import jax
import jax.numpy as jnp
from jax import lax
from jax.experimental import pallas as pl
from jax.experimental.pallas import tpu as pltpu


def _basic_block_kernel(x_ref, w1_ref, w2_ref, b1_ref, b2_ref, o_ref, xpad_ref):
    """One batch-block per grid step.

    x_ref   : (NB, H, W*C) f32      lane-dense input (W, C fused into lanes)
    w1_ref  : (3, W*C, W*C) cdt     conv1 block-Toeplitz slabs (BN1 scale folded)
    w2_ref  : (3, W*C, W*C) cdt     conv2 block-Toeplitz slabs (BN2 scale folded)
    b1_ref  : (1, W*C) f32          folded BN1 bias, tiled across W
    b2_ref  : (1, W*C) f32          folded BN2 bias, tiled across W
    o_ref   : (NB, H, W*C) f32      output
    xpad_ref: (NB*(H+2), W*C) f32   scratch: per-image row-padded activations
    """
    NB, H, WC = x_ref.shape
    HP = H + 2                      # per-image row stride in the padded scratch
    M = NB * HP - 2                 # matmul M (last image needs no trailing rows)
    cdt = w1_ref.dtype              # MXU operand dtype (bf16 by default)

    zrow = jnp.zeros((1, WC), jnp.float32)

    def stage(n, interior):
        # Full-width (lane-dense) row stores only: 2 zero halo rows + H interior.
        xpad_ref[n * HP:n * HP + 1, :] = zrow
        xpad_ref[n * HP + H + 1:n * HP + H + 2, :] = zrow
        xpad_ref[n * HP + 1:n * HP + H + 1, :] = interior

    def conv3x3(w_ref):
        # acc[n*HP + h] = conv output for image n, row h.  Three matmuls summed
        # into one f32 accumulator; operands cast to the MXU compute dtype.
        acc = None
        for dy in range(3):
            lhs = xpad_ref[dy:dy + M, :].astype(cdt)
            part = jnp.dot(lhs, w_ref[dy], preferred_element_type=jnp.float32)
            acc = part if acc is None else acc + part
        return acc

    # ---- stage input (also the residual source) into the padded scratch ----
    for n in range(NB):
        stage(n, x_ref[n])

    # ---- conv1 -> bn1 (folded) -> relu ----
    acc1 = conv3x3(w1_ref)
    b1 = b1_ref[...]
    for n in range(NB):
        out1 = jnp.maximum(acc1[n * HP:n * HP + H, :] + b1, 0.0)
        # Reuse the same scratch as conv2's input; halo rows are already zero.
        xpad_ref[n * HP + 1:n * HP + H + 1, :] = out1

    # ---- conv2 -> bn2 (folded) -> + residual (exact f32 x) -> relu ----
    acc2 = conv3x3(w2_ref)
    b2 = b2_ref[...]
    for n in range(NB):
        out = jnp.maximum(acc2[n * HP:n * HP + H, :] + b2 + x_ref[n], 0.0)
        o_ref[n] = out.astype(o_ref.dtype)


def _toeplitz_slabs(w_hwio, bn_scale, width, dtype):
    """Expand a BN-folded 3x3 conv (HWIO) into 3 block-Toeplitz slabs.

    Returns (3, W*Cin, W*Cout) with
      slab[ky][w_in*Cin + ci, w_out*Cout + co] = w[ky, kx, ci, co] * bn_scale[co]
    where w_in = w_out + kx - 1; taps falling outside [0, W) are simply absent,
    i.e. the horizontal 'SAME' zero padding is folded into the band structure.
    """
    w = w_hwio.astype(jnp.float32) * bn_scale.astype(jnp.float32)
    slabs = []
    for ky in range(3):
        slab = None
        for kx in range(3):
            band = jnp.eye(width, width, k=1 - kx, dtype=jnp.float32)
            term = jnp.kron(band, w[ky, kx])
            slab = term if slab is None else slab + term
        slabs.append(slab)
    return jnp.stack(slabs, axis=0).astype(dtype)


def basic_block_fused_layout(x_fused, w1_slabs, w2_slabs, b1_tiled, b2_tiled,
                             *, num_batch_blocks=1):
    """Core kernel call in the (N, H, W*C) interchange layout.

    x_fused: (N, H, W*C) f32.  slabs: (3, W*C, W*C).  biases: (1, W*C) f32.
    num_batch_blocks: 1 (fully fused batch) is best on single-TC v5e/v6e;
    2 keeps both v7x TensorCores busy via the "parallel" grid axis.
    """
    N, H, WC = x_fused.shape
    assert N % num_batch_blocks == 0
    NB = N // num_batch_blocks

    itemsize = jnp.dtype(w1_slabs.dtype).itemsize
    cost = pl.CostEstimate(
        flops=int(2 * 3 * 2 * num_batch_blocks * (NB * (H + 2) - 2) * WC * WC),
        transcendentals=0,
        bytes_accessed=int(2 * N * H * WC * 4
                           + 2 * 3 * WC * WC * itemsize
                           + 2 * WC * 4),
    )

    return pl.pallas_call(
        _basic_block_kernel,
        out_shape=jax.ShapeDtypeStruct((N, H, WC), jnp.float32),
        grid_spec=pltpu.PrefetchScalarGridSpec(
            num_scalar_prefetch=0,
            grid=(num_batch_blocks,),
            in_specs=[
                pl.BlockSpec((NB, H, WC), lambda n: (n, 0, 0)),
                # Constant blocks (index 0 every step): Pallas skips the re-fetch
                # when the block index does not change; with the default
                # single-step grid there is nothing to double-buffer anyway.
                pl.BlockSpec((3, WC, WC), lambda n: (0, 0, 0)),
                pl.BlockSpec((3, WC, WC), lambda n: (0, 0, 0)),
                pl.BlockSpec((1, WC), lambda n: (0, 0)),
                pl.BlockSpec((1, WC), lambda n: (0, 0)),
            ],
            out_specs=pl.BlockSpec((NB, H, WC), lambda n: (n, 0, 0)),
            scratch_shapes=[
                pltpu.VMEM((NB * (H + 2), WC), jnp.float32),
            ],
        ),
        compiler_params=pltpu.CompilerParams(
            dimension_semantics=("parallel",)),
        cost_estimate=cost,
    )(x_fused, w1_slabs, w2_slabs, b1_tiled, b2_tiled)


def basic_block_pallas(x_nchw, w1, w2, s1, b1, s2, b2, *,
                       compute_dtype=jnp.bfloat16, num_batch_blocks=1):
    """BasicBlock forward (stride=1, downsample=None), NCHW boundary.

    x_nchw: (N, C, H, W) f32.  w1/w2: (3, 3, Cin, Cout) HWIO.
    s*/b*: folded eval-mode BN scale / bias (gamma/sqrt(var+eps), beta - mean*scale).
    compute_dtype: MXU operand dtype (bf16 for ~2x matmul rate on v6e/v7x;
    jnp.float32 for bit-exact eval math).  Accumulation/epilogue are always f32.
    """
    N, C, H, W = x_nchw.shape
    Cout = w1.shape[-1]
    assert C == Cout and w2.shape[-1] == Cout, \
        "stride=1 / downsample=None requires inplanes == planes"

    # Single boundary transpose NCHW -> NHWC, then fuse (W, C) into the lane axis.
    # TODO(synk): when stacking BasicBlocks keep the (N, H, W*C) layout across
    # blocks and call basic_block_fused_layout directly (hoists these transposes).
    x = jnp.transpose(x_nchw, (0, 2, 3, 1)).astype(jnp.float32).reshape(N, H, W * C)

    # One-time parameter prep (cache these across calls in a real network).
    w1_slabs = _toeplitz_slabs(w1, s1, W, compute_dtype)
    w2_slabs = _toeplitz_slabs(w2, s2, W, compute_dtype)
    b1_tiled = jnp.tile(b1.reshape(1, Cout).astype(jnp.float32), (1, W))
    b2_tiled = jnp.tile(b2.reshape(1, Cout).astype(jnp.float32), (1, W))

    out = basic_block_fused_layout(x, w1_slabs, w2_slabs, b1_tiled, b2_tiled,
                                   num_batch_blocks=num_batch_blocks)
    out = out.reshape(N, H, W, Cout)
    return jnp.transpose(out, (0, 3, 1, 2))                 # back to NCHW


def basic_block_ref(x_nchw, w1, w2, s1, b1, s2, b2):
    """Pure-JAX f32 reference (same math, lax conv)."""
    x = jnp.transpose(x_nchw, (0, 2, 3, 1)).astype(jnp.float32)
    dn = ("NHWC", "HWIO", "NHWC")
    y = lax.conv_general_dilated(x, w1, (1, 1), "SAME", dimension_numbers=dn)
    y = jnp.maximum(y * s1 + b1, 0.0)
    y2 = lax.conv_general_dilated(y, w2, (1, 1), "SAME", dimension_numbers=dn)
    y2 = y2 * s2 + b2
    out = jnp.maximum(y2 + x, 0.0)
    return jnp.transpose(out, (0, 3, 1, 2))


if __name__ == "__main__":
    # Shapes consistent with BasicBlock(inplanes=16, planes=16, stride=1)
    N, C, H, W = 2, 16, 16, 16
    eps = 1e-5

    key = jax.random.PRNGKey(0)
    kx, kw1, kw2, kg1, kb1, km1, kv1, kg2, kb2, km2, kv2 = jax.random.split(key, 11)

    x = jax.random.normal(kx, (N, C, H, W), jnp.float32)

    # conv weights, HWIO layout (PyTorch stores OIHW; synthetic init here)
    w1 = 0.1 * jax.random.normal(kw1, (3, 3, C, C), jnp.float32)
    w2 = 0.1 * jax.random.normal(kw2, (3, 3, C, C), jnp.float32)

    # BatchNorm params (gamma, beta, running_mean, running_var) -> folded scale/bias
    g1 = 1.0 + 0.1 * jax.random.normal(kg1, (C,), jnp.float32)
    be1 = 0.1 * jax.random.normal(kb1, (C,), jnp.float32)
    m1 = 0.1 * jax.random.normal(km1, (C,), jnp.float32)
    v1 = jnp.abs(jax.random.normal(kv1, (C,), jnp.float32)) + 0.5
    g2 = 1.0 + 0.1 * jax.random.normal(kg2, (C,), jnp.float32)
    be2 = 0.1 * jax.random.normal(kb2, (C,), jnp.float32)
    m2 = 0.1 * jax.random.normal(km2, (C,), jnp.float32)
    v2 = jnp.abs(jax.random.normal(kv2, (C,), jnp.float32)) + 0.5

    s1 = g1 / jnp.sqrt(v1 + eps)
    b1 = be1 - m1 * s1
    s2 = g2 / jnp.sqrt(v2 + eps)
    b2 = be2 - m2 * s2

    ref = jax.block_until_ready(basic_block_ref(x, w1, w2, s1, b1, s2, b2))

    # 1) Exact-math path (f32 MXU operands): must match the reference tightly.
    f32_fn = jax.jit(lambda *a: basic_block_pallas(*a, compute_dtype=jnp.float32))
    out_f32 = jax.block_until_ready(f32_fn(x, w1, w2, s1, b1, s2, b2))
    assert out_f32.shape == (N, C, H, W), out_f32.shape
    assert jnp.allclose(out_f32, ref, atol=1e-4, rtol=1e-4), (
        float(jnp.max(jnp.abs(out_f32 - ref))))

    # 2) Default perf path (bf16 MXU operands, f32 accumulate/epilogue): looser tol.
    bf16_fn = jax.jit(lambda *a: basic_block_pallas(*a))
    out_bf16 = jax.block_until_ready(bf16_fn(x, w1, w2, s1, b1, s2, b2))
    assert out_bf16.shape == (N, C, H, W), out_bf16.shape
    max_err = float(jnp.max(jnp.abs(out_bf16 - ref)))
    mean_err = float(jnp.mean(jnp.abs(out_bf16 - ref)))
    assert max_err < 1.5e-1 and mean_err < 3e-2, (max_err, mean_err)

    print("KERNEL_OK")
</pallas_src>

<mosaic_0001>
module attributes {stable_mosaic.version = 11 : i64} {
  func.func @_basic_block_kernel(%arg0: i32, %arg1: memref<2x16x256xf32, #tpu.memory_space<vmem>>, %arg2: memref<3x256x256xf32, #tpu.memory_space<vmem>>, %arg3: memref<3x256x256xf32, #tpu.memory_space<vmem>>, %arg4: memref<1x256xf32, #tpu.memory_space<vmem>>, %arg5: memref<1x256xf32, #tpu.memory_space<vmem>>, %arg6: memref<2x16x256xf32, #tpu.memory_space<vmem>>, %arg7: memref<36x256xf32, #tpu.memory_space<vmem>>) attributes {dimension_semantics = [#tpu.dimension_semantics<parallel>], iteration_bounds = array<i64: 1>, scalar_prefetch = 0 : i64, scratch_operands = 1 : i64, tpu.core_type = #tpu.core_type<tc>, window_params = [{transform_indices = @transform_0, window_bounds = array<i64: 2, 16, 256>}, {pipeline_mode = #tpu.pipeline_mode<synchronous>, transform_indices = @transform_1, window_bounds = array<i64: 3, 256, 256>}, {pipeline_mode = #tpu.pipeline_mode<synchronous>, transform_indices = @transform_2, window_bounds = array<i64: 3, 256, 256>}, {pipeline_mode = #tpu.pipeline_mode<synchronous>, transform_indices = @transform_3, window_bounds = array<i64: 1, 256>}, {pipeline_mode = #tpu.pipeline_mode<synchronous>, transform_indices = @transform_4, window_bounds = array<i64: 1, 256>}, {transform_indices = @transform_5, window_bounds = array<i64: 2, 16, 256>}]} {
    %cst = arith.constant 0.000000e+00 : f32
    %0 = vector.broadcast %cst : f32 to vector<1x256xf32>
    %c0 = arith.constant 0 : index
    %c0_0 = arith.constant 0 : index
    %c0_1 = arith.constant 0 : index
    %1 = vector.load %arg1[%c0, %c0_0, %c0_1] : memref<2x16x256xf32, #tpu.memory_space<vmem>>, vector<1x16x256xf32>
    %2 = vector.shape_cast %1 : vector<1x16x256xf32> to vector<16x256xf32>
    %c0_2 = arith.constant 0 : index
    %c0_3 = arith.constant 0 : index
    %3 = vector.load %arg7[%c0_2, %c0_3] : memref<36x256xf32, #tpu.memory_space<vmem>>, vector<1x256xf32>
    tpu.vector_store %arg7[%c0_2, %c0_3], %0 {strides = array<i32>} : memref<36x256xf32, #tpu.memory_space<vmem>>, vector<1x256xf32>,
    %c17 = arith.constant 17 : index
    %c0_4 = arith.constant 0 : index
    %4 = vector.load %arg7[%c17, %c0_4] : memref<36x256xf32, #tpu.memory_space<vmem>>, vector<1x256xf32>
    tpu.vector_store %arg7[%c17, %c0_4], %0 {strides = array<i32>} : memref<36x256xf32, #tpu.memory_space<vmem>>, vector<1x256xf32>,
    %c1 = arith.constant 1 : index
    %c0_5 = arith.constant 0 : index
    %5 = vector.load %arg7[%c1, %c0_5] : memref<36x256xf32, #tpu.memory_space<vmem>>, vector<16x256xf32>
    tpu.vector_store %arg7[%c1, %c0_5], %2 {strides = array<i32>} : memref<36x256xf32, #tpu.memory_space<vmem>>, vector<16x256xf32>,
    %c1_6 = arith.constant 1 : index
    %c0_7 = arith.constant 0 : index
    %c0_8 = arith.constant 0 : index
    %6 = vector.load %arg1[%c1_6, %c0_7, %c0_8] : memref<2x16x256xf32, #tpu.memory_space<vmem>>, vector<1x16x256xf32>
    %7 = vector.shape_cast %6 : vector<1x16x256xf32> to vector<16x256xf32>
    %c18 = arith.constant 18 : index
    %c0_9 = arith.constant 0 : index
    %8 = vector.load %arg7[%c18, %c0_9] : memref<36x256xf32, #tpu.memory_space<vmem>>, vector<1x256xf32>
    tpu.vector_store %arg7[%c18, %c0_9], %0 {strides = array<i32>} : memref<36x256xf32, #tpu.memory_space<vmem>>, vector<1x256xf32>,
    %c35 = arith.constant 35 : index
    %c0_10 = arith.constant 0 : index
    %9 = vector.load %arg7[%c35, %c0_10] : memref<36x256xf32, #tpu.memory_space<vmem>>, vector<1x256xf32>
    tpu.vector_store %arg7[%c35, %c0_10], %0 {strides = array<i32>} : memref<36x256xf32, #tpu.memory_space<vmem>>, vector<1x256xf32>,
    %c19 = arith.constant 19 : index
    %c0_11 = arith.constant 0 : index
    %10 = vector.load %arg7[%c19, %c0_11] : memref<36x256xf32, #tpu.memory_space<vmem>>, vector<16x256xf32>
    tpu.vector_store %arg7[%c19, %c0_11], %7 {strides = array<i32>} : memref<36x256xf32, #tpu.memory_space<vmem>>, vector<16x256xf32>,
    %c0_12 = arith.constant 0 : index
    %c0_13 = arith.constant 0 : index
    %11 = vector.load %arg7[%c0_12, %c0_13] : memref<36x256xf32, #tpu.memory_space<vmem>>, vector<34x256xf32>
    %c0_14 = arith.constant 0 : index
    %c0_15 = arith.constant 0 : index
    %c0_16 = arith.constant 0 : index
    %12 = vector.load %arg2[%c0_14, %c0_15, %c0_16] : memref<3x256x256xf32, #tpu.memory_space<vmem>>, vector<1x256x256xf32>
    %13 = vector.shape_cast %12 : vector<1x256x256xf32> to vector<256x256xf32>
    %cst_17 = arith.constant dense<0.000000e+00> : vector<34x256xf32>
    %14 = tpu.matmul %11, %13, %cst_17 {dimension_numbers = #tpu.dot_dimension_numbers<[1], [0], [0], [1], [0, 0, 1, 1], [], []>} : vector<34x256xf32>, vector<256x256xf32>, vector<34x256xf32> -> vector<34x256xf32>
    %c1_18 = arith.constant 1 : index
    %c0_19 = arith.constant 0 : index
    %15 = vector.load %arg7[%c1_18, %c0_19] : memref<36x256xf32, #tpu.memory_space<vmem>>, vector<34x256xf32>
    %c1_20 = arith.constant 1 : index
    %c0_21 = arith.constant 0 : index
    %c0_22 = arith.constant 0 : index
    %16 = vector.load %arg2[%c1_20, %c0_21, %c0_22] : memref<3x256x256xf32, #tpu.memory_space<vmem>>, vector<1x256x256xf32>
    %17 = vector.shape_cast %16 : vector<1x256x256xf32> to vector<256x256xf32>
    %cst_23 = arith.constant dense<0.000000e+00> : vector<34x256xf32>
    %18 = tpu.matmul %15, %17, %cst_23 {dimension_numbers = #tpu.dot_dimension_numbers<[1], [0], [0], [1], [0, 0, 1, 1], [], []>} : vector<34x256xf32>, vector<256x256xf32>, vector<34x256xf32> -> vector<34x256xf32>
    %19 = arith.addf %14, %18 : vector<34x256xf32>
    %c2 = arith.constant 2 : index
    %c0_24 = arith.constant 0 : index
    %20 = vector.load %arg7[%c2, %c0_24] : memref<36x256xf32, #tpu.memory_space<vmem>>, vector<34x256xf32>
    %c2_25 = arith.constant 2 : index
    %c0_26 = arith.constant 0 : index
    %c0_27 = arith.constant 0 : index
    %21 = vector.load %arg2[%c2_25, %c0_26, %c0_27] : memref<3x256x256xf32, #tpu.memory_space<vmem>>, vector<1x256x256xf32>
    %22 = vector.shape_cast %21 : vector<1x256x256xf32> to vector<256x256xf32>
    %cst_28 = arith.constant dense<0.000000e+00> : vector<34x256xf32>
    %23 = tpu.matmul %20, %22, %cst_28 {dimension_numbers = #tpu.dot_dimension_numbers<[1], [0], [0], [1], [0, 0, 1, 1], [], []>} : vector<34x256xf32>, vector<256x256xf32>, vector<34x256xf32> -> vector<34x256xf32>
    %24 = arith.addf %19, %23 : vector<34x256xf32>
    %c0_29 = arith.constant 0 : index
    %c0_30 = arith.constant 0 : index
    %25 = vector.load %arg4[%c0_29, %c0_30] : memref<1x256xf32, #tpu.memory_space<vmem>>, vector<1x256xf32>
    %26 = vector.extract_strided_slice %24 {offsets = [0, 0], sizes = [16, 256], strides = [1, 1]} : vector<34x256xf32> to vector<16x256xf32>
    %27 = vector.broadcast %25 : vector<1x256xf32> to vector<16x256xf32>
    %28 = arith.addf %26, %27 : vector<16x256xf32>
    %cst_31 = arith.constant 0.000000e+00 : f32
    %29 = vector.broadcast %cst_31 : f32 to vector<16x256xf32>
    %30 = arith.maximumf %28, %29 : vector<16x256xf32>
    %c1_32 = arith.constant 1 : index
    %c0_33 = arith.constant 0 : index
    %31 = vector.load %arg7[%c1_32, %c0_33] : memref<36x256xf32, #tpu.memory_space<vmem>>, vector<16x256xf32>
    tpu.vector_store %arg7[%c1_32, %c0_33], %30 {strides = array<i32>} : memref<36x256xf32, #tpu.memory_space<vmem>>, vector<16x256xf32>,
    %32 = vector.extract_strided_slice %24 {offsets = [18, 0], sizes = [16, 256], strides = [1, 1]} : vector<34x256xf32> to vector<16x256xf32>
    %33 = vector.broadcast %25 : vector<1x256xf32> to vector<16x256xf32>
    %34 = arith.addf %32, %33 : vector<16x256xf32>
    %cst_34 = arith.constant 0.000000e+00 : f32
    %35 = vector.broadcast %cst_34 : f32 to vector<16x256xf32>
    %36 = arith.maximumf %34, %35 : vector<16x256xf32>
    %c19_35 = arith.constant 19 : index
    %c0_36 = arith.constant 0 : index
    %37 = vector.load %arg7[%c19_35, %c0_36] : memref<36x256xf32, #tpu.memory_space<vmem>>, vector<16x256xf32>
    tpu.vector_store %arg7[%c19_35, %c0_36], %36 {strides = array<i32>} : memref<36x256xf32, #tpu.memory_space<vmem>>, vector<16x256xf32>,
    %c0_37 = arith.constant 0 : index
    %c0_38 = arith.constant 0 : index
    %38 = vector.load %arg7[%c0_37, %c0_38] : memref<36x256xf32, #tpu.memory_space<vmem>>, vector<34x256xf32>
    %c0_39 = arith.constant 0 : index
    %c0_40 = arith.constant 0 : index
    %c0_41 = arith.constant 0 : index
    %39 = vector.load %arg3[%c0_39, %c0_40, %c0_41] : memref<3x256x256xf32, #tpu.memory_space<vmem>>, vector<1x256x256xf32>
    %40 = vector.shape_cast %39 : vector<1x256x256xf32> to vector<256x256xf32>
    %cst_42 = arith.constant dense<0.000000e+00> : vector<34x256xf32>
    %41 = tpu.matmul %38, %40, %cst_42 {dimension_numbers = #tpu.dot_dimension_numbers<[1], [0], [0], [1], [0, 0, 1, 1], [], []>} : vector<34x256xf32>, vector<256x256xf32>, vector<34x256xf32> -> vector<34x256xf32>
    %c1_43 = arith.constant 1 : index
    %c0_44 = arith.constant 0 : index
    %42 = vector.load %arg7[%c1_43, %c0_44] : memref<36x256xf32, #tpu.memory_space<vmem>>, vector<34x256xf32>
    %c1_45 = arith.constant 1 : index
    %c0_46 = arith.constant 0 : index
    %c0_47 = arith.constant 0 : index
    %43 = vector.load %arg3[%c1_45, %c0_46, %c0_47] : memref<3x256x256xf32, #tpu.memory_space<vmem>>, vector<1x256x256xf32>
    %44 = vector.shape_cast %43 : vector<1x256x256xf32> to vector<256x256xf32>
    %cst_48 = arith.constant dense<0.000000e+00> : vector<34x256xf32>
    %45 = tpu.matmul %42, %44, %cst_48 {dimension_numbers = #tpu.dot_dimension_numbers<[1], [0], [0], [1], [0, 0, 1, 1], [], []>} : vector<34x256xf32>, vector<256x256xf32>, vector<34x256xf32> -> vector<34x256xf32>
    %46 = arith.addf %41, %45 : vector<34x256xf32>
    %c2_49 = arith.constant 2 : index
    %c0_50 = arith.constant 0 : index
    %47 = vector.load %arg7[%c2_49, %c0_50] : memref<36x256xf32, #tpu.memory_space<vmem>>, vector<34x256xf32>
    %c2_51 = arith.constant 2 : index
    %c0_52 = arith.constant 0 : index
    %c0_53 = arith.constant 0 : index
    %48 = vector.load %arg3[%c2_51, %c0_52, %c0_53] : memref<3x256x256xf32, #tpu.memory_space<vmem>>, vector<1x256x256xf32>
    %49 = vector.shape_cast %48 : vector<1x256x256xf32> to vector<256x256xf32>
    %cst_54 = arith.constant dense<0.000000e+00> : vector<34x256xf32>
    %50 = tpu.matmul %47, %49, %cst_54 {dimension_numbers = #tpu.dot_dimension_numbers<[1], [0], [0], [1], [0, 0, 1, 1], [], []>} : vector<34x256xf32>, vector<256x256xf32>, vector<34x256xf32> -> vector<34x256xf32>
    %51 = arith.addf %46, %50 : vector<34x256xf32>
    %c0_55 = arith.constant 0 : index
    %c0_56 = arith.constant 0 : index
    %52 = vector.load %arg5[%c0_55, %c0_56] : memref<1x256xf32, #tpu.memory_space<vmem>>, vector<1x256xf32>
    %53 = vector.extract_strided_slice %51 {offsets = [0, 0], sizes = [16, 256], strides = [1, 1]} : vector<34x256xf32> to vector<16x256xf32>
    %54 = vector.broadcast %52 : vector<1x256xf32> to vector<16x256xf32>
    %55 = arith.addf %53, %54 : vector<16x256xf32>
    %c0_57 = arith.constant 0 : index
    %c0_58 = arith.constant 0 : index
    %c0_59 = arith.constant 0 : index
    %56 = vector.load %arg1[%c0_57, %c0_58, %c0_59] : memref<2x16x256xf32, #tpu.memory_space<vmem>>, vector<1x16x256xf32>
    %57 = vector.shape_cast %56 : vector<1x16x256xf32> to vector<16x256xf32>
    %58 = arith.addf %55, %57 : vector<16x256xf32>
    %cst_60 = arith.constant 0.000000e+00 : f32
    %59 = vector.broadcast %cst_60 : f32 to vector<16x256xf32>
    %60 = arith.maximumf %58, %59 : vector<16x256xf32>
    %c0_61 = arith.constant 0 : index
    %c0_62 = arith.constant 0 : index
    %c0_63 = arith.constant 0 : index
    %61 = vector.load %arg6[%c0_61, %c0_62, %c0_63] : memref<2x16x256xf32, #tpu.memory_space<vmem>>, vector<1x16x256xf32>
    %62 = vector.shape_cast %61 : vector<1x16x256xf32> to vector<16x256xf32>
    %63 = vector.shape_cast %60 : vector<16x256xf32> to vector<1x16x256xf32>
    tpu.vector_store %arg6[%c0_61, %c0_62, %c0_63], %63 {strides = array<i32>} : memref<2x16x256xf32, #tpu.memory_space<vmem>>, vector<1x16x256xf32>,
    %64 = vector.extract_strided_slice %51 {offsets = [18, 0], sizes = [16, 256], strides = [1, 1]} : vector<34x256xf32> to vector<16x256xf32>
    %65 = vector.broadcast %52 : vector<1x256xf32> to vector<16x256xf32>
    %66 = arith.addf %64, %65 : vector<16x256xf32>
    %c1_64 = arith.constant 1 : index
    %c0_65 = arith.constant 0 : index
    %c0_66 = arith.constant 0 : index
    %67 = vector.load %arg1[%c1_64, %c0_65, %c0_66] : memref<2x16x256xf32, #tpu.memory_space<vmem>>, vector<1x16x256xf32>
    %68 = vector.shape_cast %67 : vector<1x16x256xf32> to vector<16x256xf32>
    %69 = arith.addf %66, %68 : vector<16x256xf32>
    %cst_67 = arith.constant 0.000000e+00 : f32
    %70 = vector.broadcast %cst_67 : f32 to vector<16x256xf32>
    %71 = arith.maximumf %69, %70 : vector<16x256xf32>
    %c1_68 = arith.constant 1 : index
    %c0_69 = arith.constant 0 : index
    %c0_70 = arith.constant 0 : index
    %72 = vector.load %arg6[%c1_68, %c0_69, %c0_70] : memref<2x16x256xf32, #tpu.memory_space<vmem>>, vector<1x16x256xf32>
    %73 = vector.shape_cast %72 : vector<1x16x256xf32> to vector<16x256xf32>
    %74 = vector.shape_cast %71 : vector<16x256xf32> to vector<1x16x256xf32>
    tpu.vector_store %arg6[%c1_68, %c0_69, %c0_70], %74 {strides = array<i32>} : memref<2x16x256xf32, #tpu.memory_space<vmem>>, vector<1x16x256xf32>,
    return
  }
  func.func @transform_0(%arg0: i32) -> (i32, i32, i32) {
    %c0_i32 = arith.constant 0 : i32
    %c0_i32_0 = arith.constant 0 : i32
    %c0_i32_1 = arith.constant 0 : i32
    return %arg0, %c0_i32, %c0_i32_0 : i32, i32, i32
  }
  func.func @transform_1(%arg0: i32) -> (i32, i32, i32) {
    %c0_i32 = arith.constant 0 : i32
    %c0_i32_0 = arith.constant 0 : i32
    %c0_i32_1 = arith.constant 0 : i32
    %c0_i32_2 = arith.constant 0 : i32
    return %c0_i32, %c0_i32_0, %c0_i32_1 : i32, i32, i32
  }
  func.func @transform_2(%arg0: i32) -> (i32, i32, i32) {
    %c0_i32 = arith.constant 0 : i32
    %c0_i32_0 = arith.constant 0 : i32
    %c0_i32_1 = arith.constant 0 : i32
    %c0_i32_2 = arith.constant 0 : i32
    return %c0_i32, %c0_i32_0, %c0_i32_1 : i32, i32, i32
  }
  func.func @transform_3(%arg0: i32) -> (i32, i32) {
    %c0_i32 = arith.constant 0 : i32
    %c0_i32_0 = arith.constant 0 : i32
    %c0_i32_1 = arith.constant 0 : i32
    return %c0_i32, %c0_i32_0 : i32, i32
  }
  func.func @transform_4(%arg0: i32) -> (i32, i32) {
    %c0_i32 = arith.constant 0 : i32
    %c0_i32_0 = arith.constant 0 : i32
    %c0_i32_1 = arith.constant 0 : i32
    return %c0_i32, %c0_i32_0 : i32, i32
  }
  func.func @transform_5(%arg0: i32) -> (i32, i32, i32) {
    %c0_i32 = arith.constant 0 : i32
    %c0_i32_0 = arith.constant 0 : i32
    %c0_i32_1 = arith.constant 0 : i32
    return %arg0, %c0_i32, %c0_i32_0 : i32, i32, i32
  }
}

</mosaic_0001>

<bundles_post_ra>
// kernel: _lambda_.1
= control target key start
LH: loop header
LB: loop body
LE: loop exit
PB: predicated region body
PF: predicated region fallthrough
CT: control target
= control target key end

     0   :  { %v24_v0 = vlaneseq  ;;  %v1697_v10 = vmov 0.0   ;;  %vm37_vm1 = vcmask 1040384   ;;  %vm243_vm2 = vcmask 1046528   ;;  %s3136_s1 = inlined_call_operand.vmem [shape: f32[3,256,256], index: 1, kind: input, shape index: {}]   ;;  %s3137_s0 = inlined_call_operand.vmem [shape: f32[2,16,256], index: 0, kind: input, shape index: {}]   ;;  %s3138_s2 = inlined_call_operand.vmem [shape: f32[3,256,256], index: 2, kind: input, shape index: {}]   ;;  %s3139_s3 = inlined_call_operand.vmem [shape: f32[1,256], index: 3, kind: input, shape index: {}]   ;;  %s3140_s4 = inlined_call_operand.vmem [shape: f32[1,256], index: 4, kind: input, shape index: {}]   ;;  %s3141_s5 = inlined_call_operand.vmem [shape: f32[2,16,256], index: 5, kind: output, shape index: {}]  }
   0x1   :  { %v1463_v1 = vld [vmem:[%s3136_s1 + $0x2f8] sm:$0xff]  ;;  %v1462_v3 = vld [vmem:[%s3136_s1 + $0x2f0] sm:$0xff]  ;;  %v1461_v5 = vld [vmem:[%s3136_s1 + $0x2e8] sm:$0xff]  ;;  %vm71_vm3 = vcmask 1042432   ;;  %vm535_vm4 = vcmask 1045504   ;;  %vm1374_vm5 = vcmask 1041408  }
   0x2   :  { %v131_v2 = vld [vmem:[%s3136_s1 + $0xf8] sm:$0xff]  ;;  %272 = vmatprep.subr.mxu0 %v1463_v1  ;;  %v130_v4 = vld [vmem:[%s3136_s1 + $0xf0] sm:$0xff]  ;;  %v129_v6 = vld [vmem:[%s3136_s1 + $0xe8] sm:$0xff]  ;;  %vm26_vm0 = vcmp.lt.s32.totalorder %v24_v0, 256 }
   0x3   :  { %367 = vmatprep.subr.mxu1 %v131_v2  ;;  %273 = vmatpush1.msra.mxu0 %v1462_v3  ;;  %v1460_v7 = vld [vmem:[%s3136_s1 + $0x2e0] sm:$0xff]  ;;  %v1459_v9 = vld [vmem:[%s3136_s1 + $0x2d8] sm:$0xff]  ;;  %28 = vst.msk [vmem:[#allocation2] ss:$8 sm:$0x3] %vm26_vm0, %v1697_v10  ;;  %v1458_v12 = vld [vmem:[%s3136_s1 + $0x2d0] sm:$0xff] }
   0x4   :  { %368 = vmatpush1.msra.mxu1 %v130_v4  ;;  %v128_v8 = vld [vmem:[%s3136_s1 + $0xe0] sm:$0xff]  ;;  %31 = vst.msk [vmem:[#allocation2 + $0x21] ss:$8 sm:$0x3] %vm26_vm0, %v1697_v10  ;;  %274 = vmatprep.subr.mxu0 %v1461_v5  ;;  %v127_v11 = vld [vmem:[%s3136_s1 + $0xd8] sm:$0xff]  ;;  %v126_v13 = vld [vmem:[%s3136_s1 + $0xd0] sm:$0xff] }
   0x5   :  { %62 = vst.msk [vmem:[#allocation2 + $0x22] ss:$8 sm:$0x3] %vm26_vm0, %v1697_v10  ;;  %65 = vst.msk [vmem:[#allocation2 + $0x43] ss:$8 sm:$0x3] %vm26_vm0, %v1697_v10  ;;  %369 = vmatprep.subr.mxu1 %v129_v6  ;;  %275 = vmatpush1.msra.mxu0 %v1460_v7 }
   0x6   :  { %370 = vmatpush1.msra.mxu1 %v128_v8  ;;  %v1457_v14 = vld [vmem:[%s3136_s1 + $0x2c8] sm:$0xff]  ;;  %276 = vmatprep.subr.mxu0 %v1459_v9  ;;  %v1456_v16 = vld [vmem:[%s3136_s1 + $0x2c0] sm:$0xff]  ;;  %v1455_v18 = vld [vmem:[%s3136_s1 + $0x2b8] sm:$0xff] }
   0x7   :  { %v125_v15 = vld [vmem:[%s3136_s1 + $0xc8] sm:$0xff]  ;;  %371 = vmatprep.subr.mxu1 %v127_v11  ;;  %v124_v17 = vld [vmem:[%s3136_s1 + $0xc0] sm:$0xff]  ;;  %277 = vmatpush1.msra.mxu0 %v1458_v12  ;;  %v123_v19 = vld [vmem:[%s3136_s1 + $0xb8] sm:$0xff] }
   0x8   :  { %372 = vmatpush1.msra.mxu1 %v126_v13  ;;  %278 = vmatprep.subr.mxu0 %v1457_v14  ;;  %v1454_v20 = vld [vmem:[%s3136_s1 + $0x2b0] sm:$0xff]  ;;  %v1453_v22 = vld [vmem:[%s3136_s1 + $0x2a8] sm:$0xff]  ;;  %v1452_v24 = vld [vmem:[%s3136_s1 + $0x2a0] sm:$0xff] }
   0x9   :  { %373 = vmatprep.subr.mxu1 %v125_v15  ;;  %v122_v21 = vld [vmem:[%s3136_s1 + $0xb0] sm:$0xff]  ;;  %279 = vmatpush1.msra.mxu0 %v1456_v16  ;;  %v121_v23 = vld [vmem:[%s3136_s1 + $0xa8] sm:$0xff]  ;;  %v120_v25 = vld [vmem:[%s3136_s1 + $0xa0] sm:$0xff] }
   0xa   :  { %374 = vmatpush1.msra.mxu1 %v124_v17  ;;  %280 = vmatprep.subr.mxu0 %v1455_v18  ;;  %v1451_v26 = vld [vmem:[%s3136_s1 + $0x298] sm:$0xff]  ;;  %v1450_v28 = vld [vmem:[%s3136_s1 + $0x290] sm:$0xff]  ;;  %v1449_v30 = vld [vmem:[%s3136_s1 + $0x288] sm:$0xff] }
   0xb   :  { %375 = vmatprep.subr.mxu1 %v123_v19  ;;  %281 = vmatpush1.msra.mxu0 %v1454_v20  ;;  %v119_v27 = vld [vmem:[%s3136_s1 + $0x98] sm:$0xff]  ;;  %v118_v29 = vld [vmem:[%s3136_s1 + $0x90] sm:$0xff]  ;;  %v117_v31 = vld [vmem:[%s3136_s1 + $0x88] sm:$0xff] }
   0xc   :  { %376 = vmatpush1.msra.mxu1 %v122_v21  ;;  %282 = vmatprep.subr.mxu0 %v1453_v22  ;;  %v1448_v32 = vld [vmem:[%s3136_s1 + $0x280] sm:$0xff]  ;;  %v1447_v34 = vld [vmem:[%s3136_s1 + $0x278] sm:$0xff]  ;;  %v1446_v36 = vld [vmem:[%s3136_s1 + $0x270] sm:$0xff] }
   0xd   :  { %377 = vmatprep.subr.mxu1 %v121_v23  ;;  %283 = vmatpush1.msra.mxu0 %v1452_v24  ;;  %v116_v33 = vld [vmem:[%s3136_s1 + $0x80] sm:$0xff]  ;;  %v115_v35 = vld [vmem:[%s3136_s1 + $0x78] sm:$0xff]  ;;  %v114_v37 = vld [vmem:[%s3136_s1 + $0x70] sm:$0xff] }
   0xe   :  { %378 = vmatpush1.msra.mxu1 %v120_v25  ;;  %284 = vmatprep.subr.mxu0 %v1451_v26  ;;  %v1445_v38 = vld [vmem:[%s3136_s1 + $0x268] sm:$0xff]  ;;  %v1444_v40 = vld [vmem:[%s3136_s1 + $0x260] sm:$0xff]  ;;  %v1443_v42 = vld [vmem:[%s3136_s1 + $0x258] sm:$0xff] }
   0xf   :  { %379 = vmatprep.subr.mxu1 %v119_v27  ;;  %285 = vmatpush1.msra.mxu0 %v1450_v28  ;;  %v113_v39 = vld [vmem:[%s3136_s1 + $0x68] sm:$0xff]  ;;  %v112_v41 = vld [vmem:[%s3136_s1 + $0x60] sm:$0xff]  ;;  %v111_v43 = vld [vmem:[%s3136_s1 + $0x58] sm:$0xff] }
  0x10   :  { %380 = vmatpush1.msra.mxu1 %v118_v29  ;;  %286 = vmatprep.subr.mxu0 %v1449_v30  ;;  %v1442_v44 = vld [vmem:[%s3136_s1 + $0x250] sm:$0xff]  ;;  %v1441_v46 = vld [vmem:[%s3136_s1 + $0x248] sm:$0xff]  ;;  %v1440_v48 = vld [vmem:[%s3136_s1 + $0x240] sm:$0xff] }
  0x11   :  { %381 = vmatprep.subr.mxu1 %v117_v31  ;;  %287 = vmatpush1.msra.mxu0 %v1448_v32  ;;  %v110_v45 = vld [vmem:[%s3136_s1 + $0x50] sm:$0xff]  ;;  %v109_v47 = vld [vmem:[%s3136_s1 + $0x48] sm:$0xff]  ;;  %v108_v49 = vld [vmem:[%s3136_s1 + $0x40] sm:$0xff] }
  0x12   :  { %382 = vmatpush1.msra.mxu1 %v116_v33  ;;  %288 = vmatprep.subr.mxu0 %v1447_v34  ;;  %v1439_v50 = vld [vmem:[%s3136_s1 + $0x238] sm:$0xff]  ;;  %v1438_v52 = vld [vmem:[%s3136_s1 + $0x230] sm:$0xff]  ;;  %v1437_v54 = vld [vmem:[%s3136_s1 + $0x228] sm:$0xff] }
  0x13   :  { %383 = vmatprep.subr.mxu1 %v115_v35  ;;  %289 = vmatpush1.msra.mxu0 %v1446_v36  ;;  %v107_v51 = vld [vmem:[%s3136_s1 + $0x38] sm:$0xff]  ;;  %v106_v53 = vld [vmem:[%s3136_s1 + $0x30] sm:$0xff]  ;;  %v105_v55 = vld [vmem:[%s3136_s1 + $0x28] sm:$0xff] }
  0x14   :  { %384 = vmatpush1.msra.mxu1 %v114_v37  ;;  %290 = vmatprep.subr.mxu0 %v1445_v38  ;;  %v1436_v56 = vld [vmem:[%s3136_s1 + $0x220] sm:$0xff]  ;;  %v1435_v58 = vld [vmem:[%s3136_s1 + $0x218] sm:$0xff]  ;;  %v1434_v60 = vld [vmem:[%s3136_s1 + $0x210] sm:$0xff] }
  0x15   :  { %385 = vmatprep.subr.mxu1 %v113_v39  ;;  %291 = vmatpush1.msra.mxu0 %v1444_v40  ;;  %v104_v57 = vld [vmem:[%s3136_s1 + $0x20] sm:$0xff]  ;;  %v103_v59 = vld [vmem:[%s3136_s1 + $0x18] sm:$0xff]  ;;  %v102_v61 = vld [vmem:[%s3136_s1 + $0x10] sm:$0xff] }
  0x16   :  { %386 = vmatpush1.msra.mxu1 %v112_v41  ;;  %292 = vmatprep.subr.mxu0 %v1443_v42  ;;  %v1433_v62 = vld [vmem:[%s3136_s1 + $0x208] sm:$0xff]  ;;  %v1432_v1 = vld [vmem:[%s3136_s1 + $0x200] sm:$0xff]  ;;  %v1495_v3 = vld [vmem:[%s3136_s1 + $0x3f8] sm:$0xff] }
  0x17   :  { %387 = vmatprep.subr.mxu1 %v111_v43  ;;  %293 = vmatpush1.msra.mxu0 %v1442_v44  ;;  %v101_v63 = vld [vmem:[%s3136_s1 + $0x8] sm:$0xff]  ;;  %v100_v2 = vld [vmem:[%s3136_s1] sm:$0xff]  ;;  %v163_v4 = vld [vmem:[%s3136_s1 + $0x1f8] sm:$0xff] }
  0x18   :  { %388 = vmatpush1.msra.mxu1 %v110_v45  ;;  %294 = vmatprep.subr.mxu0 %v1441_v46  ;;  %v1494_v5 = vld [vmem:[%s3136_s1 + $0x3f0] sm:$0xff]  ;;  %v1493_v7 = vld [vmem:[%s3136_s1 + $0x3e8] sm:$0xff]  ;;  %v1492_v9 = vld [vmem:[%s3136_s1 + $0x3e0] sm:$0xff] }
  0x19   :  { %389 = vmatprep.subr.mxu1 %v109_v47  ;;  %295 = vmatpush1.msra.mxu0 %v1440_v48  ;;  %v162_v6 = vld [vmem:[%s3136_s1 + $0x1f0] sm:$0xff]  ;;  %v161_v8 = vld [vmem:[%s3136_s1 + $0x1e8] sm:$0xff]  ;;  %v160_v10 = vld [vmem:[%s3136_s1 + $0x1e0] sm:$0xff] }
  0x1a   :  { %390 = vmatpush1.msra.mxu1 %v108_v49  ;;  %296 = vmatprep.subr.mxu0 %v1439_v50  ;;  %v1491_v11 = vld [vmem:[%s3136_s1 + $0x3d8] sm:$0xff]  ;;  %v1490_v13 = vld [vmem:[%s3136_s1 + $0x3d0] sm:$0xff]  ;;  %v1489_v15 = vld [vmem:[%s3136_s1 + $0x3c8] sm:$0xff] }
  0x1b   :  { %391 = vmatprep.subr.mxu1 %v107_v51  ;;  %297 = vmatpush1.msra.mxu0 %v1438_v52  ;;  %v159_v12 = vld [vmem:[%s3136_s1 + $0x1d8] sm:$0xff]  ;;  %v158_v14 = vld [vmem:[%s3136_s1 + $0x1d0] sm:$0xff]  ;;  %v157_v16 = vld [vmem:[%s3136_s1 + $0x1c8] sm:$0xff] }
  0x1c   :  { %392 = vmatpush1.msra.mxu1 %v106_v53  ;;  %298 = vmatprep.subr.mxu0 %v1437_v54  ;;  %v1488_v17 = vld [vmem:[%s3136_s1 + $0x3c0] sm:$0xff]  ;;  %v1487_v19 = vld [vmem:[%s3136_s1 + $0x3b8] sm:$0xff]  ;;  %v1486_v21 = vld [vmem:[%s3136_s1 + $0x3b0] sm:$0xff] }
  0x1d   :  { %393 = vmatprep.subr.mxu1 %v105_v55  ;;  %299 = vmatpush1.msra.mxu0 %v1436_v56  ;;  %v156_v18 = vld [vmem:[%s3136_s1 + $0x1c0] sm:$0xff]  ;;  %v155_v20 = vld [vmem:[%s3136_s1 + $0x1b8] sm:$0xff]  ;;  %v154_v22 = vld [vmem:[%s3136_s1 + $0x1b0] sm:$0xff] }
  0x1e   :  { %394 = vmatpush1.msra.mxu1 %v104_v57  ;;  %300 = vmatprep.subr.mxu0 %v1435_v58  ;;  %v1485_v23 = vld [vmem:[%s3136_s1 + $0x3a8] sm:$0xff]  ;;  %v1484_v25 = vld [vmem:[%s3136_s1 + $0x3a0] sm:$0xff]  ;;  %v1483_v27 = vld [vmem:[%s3136_s1 + $0x398] sm:$0xff] }
  0x1f   :  { %395 = vmatprep.subr.mxu1 %v103_v59  ;;  %301 = vmatpush1.msra.mxu0 %v1434_v60  ;;  %v153_v24 = vld [vmem:[%s3136_s1 + $0x1a8] sm:$0xff]  ;;  %v152_v26 = vld [vmem:[%s3136_s1 + $0x1a0] sm:$0xff]  ;;  %v151_v28 = vld [vmem:[%s3136_s1 + $0x198] sm:$0xff] }
  0x20   :  { %396 = vmatpush1.msra.mxu1 %v102_v61  ;;  %302 = vmatprep.subr.mxu0 %v1433_v62  ;;  %v1482_v29 = vld [vmem:[%s3136_s1 + $0x390] sm:$0xff]  ;;  %v21_v30 = vld [vmem:[%s3137_s0 + $0x8] sm:$0xff]  ;;  %v23_v31 = vld [vmem:[%s3137_s0 + $0x18] sm:$0xff] }
  0x21   :  { %397 = vmatprep.subr.mxu1 %v101_v63  ;;  %303 = vmatpush1.msra.mxu0 %v1432_v1  ;;  %v150_v32 = vld [vmem:[%s3136_s1 + $0x190] sm:$0xff]  ;;  %v39_v33 = vrot.slane %v21_v30, 7  ;;  %v42_v34 = vrot.slane %v23_v31, 7  ;;  %v2014_v35 = vld [vmem:[%s3137_s0] sm:$0xff]  ;;  %v1481_v37 = vld [vmem:[%s3136_s1 + $0x388] sm:$0xff] }
  0x22   :  { %398 = vmatpush1.msra.mxu1 %v100_v2  ;;  %304 = vmatprep.subr.mxu0 %v1495_v3  ;;  %v2019_v36 = vld [vmem:[%s3137_s0 + $0x10] sm:$0xff]  ;;  %v149_v38 = vld [vmem:[%s3136_s1 + $0x188] sm:$0xff]  ;;  %v38_v39 = vrot.slane %v2014_v35, 7  ;;  %v1480_v41 = vld [vmem:[%s3136_s1 + $0x380] sm:$0xff] }
  0x23   :  { %399 = vmatprep.subr.mxu1 %v163_v4  ;;  %305 = vmatpush2.msra.mxu0 %v1494_v5  ;;  %v40_v40 = vrot.slane %v2019_v36, 7  ;;  %v148_v42 = vld [vmem:[%s3136_s1 + $0x180] sm:$0xff]  ;;  %51 = vst [vmem:[#allocation2 + $0x8] sm:$0xfe] %v39_v33  ;;  %55 = vst [vmem:[#allocation2 + $0x28] sm:$0x1] %v42_v34  ;;  %v2090_v61 = vsel %vm37_vm1, %v39_v33, %v42_v34 }
  0x24   :  { %400 = vmatpush2.msra.mxu1 %v162_v6  ;;  %306 = vmatprep.subr.mxu0 %v1493_v7  ;;  %v1479_v43 = vld [vmem:[%s3136_s1 + $0x378] sm:$0xff]  ;;  %50 = vst [vmem:[#allocation2] sm:$0xfe] %v38_v39  ;;  %v1478_v45 = vld [vmem:[%s3136_s1 + $0x370] sm:$0xff]  ;;  %v1477_v47 = vld [vmem:[%s3136_s1 + $0x368] sm:$0xff] }
  0x25   :  { %401 = vmatprep.subr.mxu1 %v161_v8  ;;  %307 = vmatpush2.msra.mxu0 %v1492_v9  ;;  %v147_v44 = vld [vmem:[%s3136_s1 + $0x178] sm:$0xff]  ;;  %54 = vst [vmem:[#allocation2 + $0x20] sm:$0x1] %v40_v40  ;;  %v146_v46 = vld [vmem:[%s3136_s1 + $0x170] sm:$0xff]  ;;  %v145_v48 = vld [vmem:[%s3136_s1 + $0x168] sm:$0xff]  ;;  %v2105_v4 = vsel %vm37_vm1, %v38_v39, %v40_v40  ;;  %v248_v9 = vrot.slane %v2090_v61, 1 }
  0x26   :  { %402 = vmatpush2.msra.mxu1 %v160_v10  ;;  %308 = vmatprep.subr.mxu0 %v1491_v11  ;;  %v1476_v49 = vld [vmem:[%s3136_s1 + $0x360] sm:$0xff]  ;;  %v1475_v51 = vld [vmem:[%s3136_s1 + $0x358] sm:$0xff]  ;;  %v1474_v53 = vld [vmem:[%s3136_s1 + $0x350] sm:$0xff] }
  0x27   :  { %403 = vmatprep.subr.mxu1 %v159_v12  ;;  %309 = vmatpush2.msra.mxu0 %v1490_v13  ;;  %v144_v50 = vld [vmem:[%s3136_s1 + $0x160] sm:$0xff]  ;;  %v143_v52 = vld [vmem:[%s3136_s1 + $0x158] sm:$0xff]  ;;  %v142_v54 = vld [vmem:[%s3136_s1 + $0x150] sm:$0xff] }
  0x28   :  { %404 = vmatpush2.msra.mxu1 %v158_v14  ;;  %310 = vmatprep.subr.mxu0 %v1489_v15  ;;  %v1473_v55 = vld [vmem:[%s3136_s1 + $0x348] sm:$0xff]  ;;  %v1472_v57 = vld [vmem:[%s3136_s1 + $0x340] sm:$0xff]  ;;  %v1471_v59 = vld [vmem:[%s3136_s1 + $0x338] sm:$0xff]  ;;  %v245_v15 = vrot.slane %v2105_v4, 1 }
  0x29   :  { %405 = vmatprep.subr.mxu1 %v157_v16  ;;  %311 = vmatpush2.msra.mxu0 %v1488_v17  ;;  %v141_v56 = vld [vmem:[%s3136_s1 + $0x148] sm:$0xff]  ;;  %v140_v58 = vld [vmem:[%s3136_s1 + $0x140] sm:$0xff]  ;;  %v139_v60 = vld [vmem:[%s3136_s1 + $0x138] sm:$0xff] }
  0x2a   :  { %406 = vmatpush2.msra.mxu1 %v156_v18  ;;  %312 = vmatprep.subr.mxu0 %v1487_v19  ;;  %v165_v62 = vld [vmem:[#allocation2 + $0x8] sm:$0xfe]  ;;  %v1470_v63 = vld [vmem:[%s3136_s1 + $0x330] sm:$0xff]  ;;  %v1468_v6 = vld [vmem:[%s3136_s1 + $0x320] sm:$0xff] }
  0x2b   :  { %407 = vmatprep.subr.mxu1 %v155_v20  ;;  %313 = vmatpush2.msra.mxu0 %v1486_v21  ;;  %v138_v1 = vld [vmem:[%s3136_s1 + $0x130] sm:$0xff]  ;;  %v1469_v2 = vld [vmem:[%s3136_s1 + $0x328] sm:$0xff]  ;;  %v164_v5 = vld [vmem:[#allocation2] sm:$0xfe]  ;;  %v247_v8 = vrot.slane %v165_v62, 1 }
  0x2c   :  { %408 = vmatpush2.msra.mxu1 %v154_v22  ;;  %314 = vmatprep.subr.mxu0 %v1485_v23  ;;  %v137_v3 = vld [vmem:[%s3136_s1 + $0x128] sm:$0xff]  ;;  %v136_v7 = vld [vmem:[%s3136_s1 + $0x120] sm:$0xff]  ;;  %v1467_v10 = vld [vmem:[%s3136_s1 + $0x318] sm:$0xff]  ;;  %v244_v14 = vrot.slane %v164_v5, 1 }
  0x2d   :  { %409 = vmatprep.subr.mxu1 %v153_v24  ;;  %315 = vmatpush2.msra.mxu0 %v1484_v25  ;;  %v135_v11 = vld [vmem:[%s3136_s1 + $0x118] sm:$0xff]  ;;  %v1466_v12 = vld [vmem:[%s3136_s1 + $0x310] sm:$0xff]  ;;  %v1465_v16 = vld [vmem:[%s3136_s1 + $0x308] sm:$0xff]  ;;  %v249_v20 = vsel %vm243_vm2, %v247_v8, %v248_v9 }
  0x2e   :  { %410 = vmatpush2.msra.mxu1 %v152_v26  ;;  %316 = vmatprep.subr.mxu0 %v1483_v27  ;;  %v134_v13 = vld [vmem:[%s3136_s1 + $0x110] sm:$0xff]  ;;  %v133_v17 = vld [vmem:[%s3136_s1 + $0x108] sm:$0xff]  ;;  %v1464_v19 = vld [vmem:[%s3136_s1 + $0x300] sm:$0xff]  ;;  %v246_v27 = vsel %vm243_vm2, %v244_v14, %v245_v15 }
  0x2f   :  { %411 = vmatprep.subr.mxu1 %v151_v28  ;;  %317 = vmatpush2.msra.mxu0 %v1482_v29  ;;  %v1429_v18 = vld [vmem:[%s3137_s0 + $0x28] sm:$0xff]  ;;  %v1428_v22 = vld [vmem:[%s3137_s0 + $0x20] sm:$0xff]  ;;  %v1431_v26 = vld [vmem:[%s3137_s0 + $0x38] sm:$0xff] }
  0x30   :  { %412 = vmatpush2.msra.mxu1 %v150_v32  ;;  %318 = vmatprep.subr.mxu0 %v1481_v37  ;;  %v73_v21 = vrot.slane %v1429_v18, 5  ;;  %v132_v23 = vld [vmem:[%s3136_s1 + $0x100] sm:$0xff]  ;;  %v91_v24 = vld [vmem:[#allocation2 + $0x8] sm:$0xff]  ;;  %v72_v25 = vrot.slane %v1428_v22, 5  ;;  %v76_v29 = vrot.slane %v1431_v26, 5  ;;  %v1430_v30 = vld [vmem:[%s3137_s0 + $0x30] sm:$0xff] }
  0x31   :  { %413 = vmatprep.subr.mxu1 %v149_v38  ;;  %319 = vmatpush2.msra.mxu0 %v1480_v41  ;;  %v90_v28 = vld [vmem:[#allocation2] sm:$0xff]  ;;  %v1527_v31 = vld [vmem:[%s3136_s1 + $0x4f8] sm:$0xff]  ;;  %v74_v32 = vrot.slane %v1430_v30, 5  ;;  %v1526_v33 = vld [vmem:[%s3136_s1 + $0x4f0] sm:$0xff] }
  0x32   :  { %414 = vmatpush2.msra.mxu1 %v148_v42  ;;  %320 = vmatprep.subr.mxu0 %v1479_v43  ;;  %85 = vst [vmem:[#allocation2 + $0x28] sm:$0xf8] %v73_v21  ;;  %84 = vst [vmem:[#allocation2 + $0x20] sm:$0xf8] %v72_v25  ;;  %v1525_v34 = vld [vmem:[%s3136_s1 + $0x4e8] sm:$0xff]  ;;  %v2167_v35 = vsel %vm71_vm3, %v73_v21, %v76_v29  ;;  %v1524_v36 = vld [vmem:[%s3136_s1 + $0x4e0] sm:$0xff] }
  0x33   :  { %415 = vmatprep.subr.mxu1 %v147_v44  ;;  %321 = vmatpush2.msra.mxu0 %v1478_v45  ;;  %89 = vst [vmem:[#allocation2 + $0x48] sm:$0x7] %v76_v29  ;;  %88 = vst [vmem:[#allocation2 + $0x40] sm:$0x7] %v74_v32  ;;  %v1523_v37 = vld [vmem:[%s3136_s1 + $0x4d8] sm:$0xff]  ;;  %v1522_v38 = vld [vmem:[%s3136_s1 + $0x4d0] sm:$0xff]  ;;  %v2181_v40 = vsel %vm71_vm3, %v72_v25, %v74_v32 }
  0x34   :  { %416 = vmatpush2.msra.mxu1 %v146_v46  ;;  %322 = vmatprep.subr.mxu0 %v1477_v47  ;;  %v256_v39 = vrot.slane %v2167_v35, 1  ;;  %v1521_v41 = vld [vmem:[%s3136_s1 + $0x4c8] sm:$0xff]  ;;  %v1520_v43 = vld [vmem:[%s3136_s1 + $0x4c0] sm:$0xff]  ;;  %v1519_v46 = vld [vmem:[%s3136_s1 + $0x4b8] sm:$0xff] }
  0x35   :  { %417 = vmatprep.subr.mxu1 %v145_v48  ;;  %323 = vmatpush2.msra.mxu0 %v1476_v49  ;;  %v254_v48 = vrot.slane %v2181_v40, 1  ;;  %v1514_v62 = vld [vmem:[%s3136_s1 + $0x490] sm:$0xff]  ;;  %v1507_v14 = vld [vmem:[%s3136_s1 + $0x458] sm:$0xff]  ;;  %v1504_v18 = vld [vmem:[%s3136_s1 + $0x440] sm:$0xff] }
  0x36   :  { %418 = vmatpush2.msra.mxu1 %v144_v50  ;;  %324 = vmatprep.subr.mxu0 %v1475_v51  ;;  %v1518_v50 = vld [vmem:[%s3136_s1 + $0x4b0] sm:$0xff]  ;;  %v1501_v21 = vld [vmem:[%s3136_s1 + $0x428] sm:$0xff]  ;;  %v1500_v22 = vld [vmem:[%s3136_s1 + $0x420] sm:$0xff] }
  0x37   :  { %419 = vmatprep.subr.mxu1 %v143_v52  ;;  %325 = vmatpush2.msra.mxu0 %v1474_v53  ;;  %v1510_v8 = vld [vmem:[%s3136_s1 + $0x470] sm:$0xff]  ;;  %v1497_v25 = vld [vmem:[%s3136_s1 + $0x408] sm:$0xff]  ;;  %v1496_v26 = vld [vmem:[%s3136_s1 + $0x400] sm:$0xff] }
  0x38   :  { %420 = vmatpush2.msra.mxu1 %v142_v54  ;;  %326 = vmatprep.subr.mxu0 %v1473_v55  ;;  %v1517_v55 = vld [vmem:[%s3136_s1 + $0x4a8] sm:$0xff]  ;;  %v1556_v30 = vld [vmem:[%s3136_s1 + $0x5e0] sm:$0xff]  ;;  %v1554_v32 = vld [vmem:[%s3136_s1 + $0x5d0] sm:$0xff] }
  0x39   :  { %421 = vmatprep.subr.mxu1 %v141_v56  ;;  %327 = vmatpush2.msra.mxu0 %v1472_v57  ;;  %v2186_v42 = vld [vmem:[#allocation2 + $0x28] sm:$0xff]  ;;  %v2193_v45 = vld [vmem:[#allocation2 + $0x20] sm:$0xff] }
  0x3a   :  { %422 = vmatpush2.msra.mxu1 %v140_v58  ;;  %328 = vmatprep.subr.mxu0 %v1471_v59  ;;  %v252_v44 = vrot.slane %v2186_v42, 1  ;;  %v250_v47 = vrot.slane %v2193_v45, 1  ;;  %v167_v49 = vld [vmem:[#allocation2 + $0x48] sm:$0x7]  ;;  %v166_v54 = vld [vmem:[#allocation2 + $0x40] sm:$0x7] }
  0x3b   :  { %423 = vmatprep.subr.mxu1 %v139_v60  ;;  %329 = vmatpush2.msra.mxu0 %v1470_v63  ;;  %v260_v53 = vrot.slane %v167_v49, 1  ;;  %v1516_v57 = vld [vmem:[%s3136_s1 + $0x4a0] sm:$0xff]  ;;  %v1515_v58 = vld [vmem:[%s3136_s1 + $0x498] sm:$0xff]  ;;  %v258_v60 = vrot.slane %v166_v54, 1  ;;  %v99_v5 = vld [vmem:[#allocation2 + $0x48] sm:$0x3] }
  0x3c   :  { %424 = vmatpush2.msra.mxu1 %v138_v1  ;;  %330 = vmatprep.subr.mxu0 %v1469_v2  ;;  %v253_v51 = vsel %vm243_vm2, %v248_v9, %v252_v44  ;;  %v257_v52 = vsel %vm243_vm2, %v252_v44, %v256_v39  ;;  %v251_v56 = vsel %vm243_vm2, %v245_v15, %v250_v47  ;;  %v1513_v1 = vld [vmem:[%s3136_s1 + $0x488] sm:$0xff]  ;;  %v1506_v15 = vld [vmem:[%s3136_s1 + $0x450] sm:$0xff]  ;;  %v1536_v54 = vld [vmem:[%s3136_s1 + $0x540] sm:$0xff] }
  0x3d   :  { %425 = vmatprep.subr.mxu1 %v137_v3  ;;  %331 = vmatpush2.msra.mxu0 %v1468_v6  ;;  %v255_v59 = vsel %vm243_vm2, %v250_v47, %v254_v48  ;;  %v261_v63 = vsel %vm243_vm2, %v256_v39, %v260_v53  ;;  %v463_v2 = vld [vmem:[#allocation2 + $0x8] sm:$0xfc]  ;;  %v1512_v3 = vld [vmem:[%s3136_s1 + $0x480] sm:$0xff]  ;;  %v1511_v6 = vld [vmem:[%s3136_s1 + $0x478] sm:$0xff] }
  0x3e   :  { %426 = vmatpush2.msra.mxu1 %v136_v7  ;;  %332 = vmatprep.subr.mxu0 %v1467_v10  ;;  %v259_v7 = vsel %vm243_vm2, %v254_v48, %v258_v60  ;;  %v539_v9 = vrot.slane %v463_v2, 2  ;;  %v540_v10 = vrot.slane %v2090_v61, 2  ;;  %v1557_v29 = vld [vmem:[%s3136_s1 + $0x5e8] sm:$0xff]  ;;  %v1548_v39 = vld [vmem:[%s3136_s1 + $0x5a0] sm:$0xff]  ;;  %v1543_v47 = vld [vmem:[%s3136_s1 + $0x578] sm:$0xff]  ;;  %v544_v2 = vrot.slane %v2186_v42, 2 }
  0x3f   :  { %427 = vmatprep.subr.mxu1 %v135_v11  ;;  %333 = vmatpush2.msra.mxu0 %v1466_v12  ;;  %v1509_v11 = vld [vmem:[%s3136_s1 + $0x468] sm:$0xff]  ;;  %v98_v12 = vld [vmem:[#allocation2 + $0x40] sm:$0x3]  ;;  %v1542_v48 = vld [vmem:[%s3136_s1 + $0x570] sm:$0xff] }
  0x40   :  { %428 = vmatpush2.msra.mxu1 %v134_v13  ;;  %334 = vmatprep.subr.mxu0 %v1465_v16  ;;  %v1508_v13 = vld [vmem:[%s3136_s1 + $0x460] sm:$0xff]  ;;  %v541_v16 = vsel %vm535_vm4, %v539_v9, %v540_v10  ;;  %v1545_v44 = vld [vmem:[%s3136_s1 + $0x588] sm:$0xff] }
  0x41   :  { %429 = vmatprep.subr.mxu1 %v133_v17  ;;  %335 = vmatpush2.msra.mxu0 %v1464_v19  ;;  %v1505_v17 = vld [vmem:[%s3136_s1 + $0x448] sm:$0xff]  ;;  %v1503_v19 = vld [vmem:[%s3136_s1 + $0x438] sm:$0xff] }
  0x42   :  { %336 = vmatprep.mubr.f32.mxu0 %v249_v20  ;;  %430 = vmatpush2.msra.mxu1 %v132_v23  ;;  %v1502_v20 = vld [vmem:[%s3136_s1 + $0x430] sm:$0xff]  ;;  %v1499_v23 = vld [vmem:[%s3136_s1 + $0x418] sm:$0xff]  ;;  %v1541_v49 = vld [vmem:[%s3136_s1 + $0x568] sm:$0xff] }
  0x43   :  { %431 = vmatprep.mubr.f32.mxu1 %v91_v24  ;;  %337 = vmatmul.mubr.f32.vlgmr.msra.gmra.mxu0 %v246_v27  ;;  %v1498_v24 = vld [vmem:[%s3136_s1 + $0x410] sm:$0xff]  ;;  %v1559_v27 = vld [vmem:[%s3136_s1 + $0x5f8] sm:$0xff] }
  0x44   :  { %432 = vmatmul.mubr.f32.vlgmr.msra.gmra.mxu1 %v90_v28  ;;  %564 = vmatprep.subr.mxu0 %v1527_v31  ;;  %v1558_v28 = vld [vmem:[%s3136_s1 + $0x5f0] sm:$0xff]  ;;  %v1555_v31 = vld [vmem:[%s3136_s1 + $0x5d8] sm:$0xff] }
  0x45   :  { %437 = vmatprep.mubr.f32.mxu1 %v2090_v61  ;;  %565 = vmatpush1.msra.mxu0 %v1526_v33  ;;  %v1553_v33 = vld [vmem:[%s3136_s1 + $0x5c8] sm:$0xff]  ;;  %v792_v61 = vld [vmem:[%s3138_s2 + $0xf8] sm:$0xff] }
  0x46   :  { %566 = vmatprep.subr.mxu0 %v1525_v34  ;;  %342 = vmatprep.mubr.f32.mxu0 %v253_v51  ;;  %v1552_v34 = vld [vmem:[%s3136_s1 + $0x5c0] sm:$0xff]  ;;  %v1539_v51 = vld [vmem:[%s3136_s1 + $0x558] sm:$0xff] }
  0x47   :  { %567 = vmatpush1.msra.mxu0 %v1524_v36  ;;  %v1551_v36 = vld [vmem:[%s3136_s1 + $0x5b8] sm:$0xff] }
  0x48   :  { %438 = vmatmul.mubr.f32.gmra.mxu1 %v2105_v4  ;;  %568 = vmatprep.subr.mxu0 %v1523_v37  ;;  %v1550_v37 = vld [vmem:[%s3136_s1 + $0x5b0] sm:$0xff] }
  0x49   :  { %443 = vmatprep.mubr.f32.mxu1 %v2186_v42  ;;  %569 = vmatpush1.msra.mxu0 %v1522_v38  ;;  %v1549_v38 = vld [vmem:[%s3136_s1 + $0x5a8] sm:$0xff]  ;;  %v545_v42 = vsel %vm535_vm4, %v540_v10, %v544_v2 }
  0x4a   :  { %570 = vmatprep.subr.mxu0 %v1521_v41  ;;  %343 = vmatmul.mubr.f32.gmra.mxu0 %v251_v56  ;;  %v1547_v41 = vld [vmem:[%s3136_s1 + $0x598] sm:$0xff]  ;;  %v1534_v56 = vld [vmem:[%s3136_s1 + $0x530] sm:$0xff] }
  0x4b   :  { %571 = vmatpush1.msra.mxu0 %v1520_v43  ;;  %348 = vmatprep.mubr.f32.mxu0 %v257_v52  ;;  %v1546_v43 = vld [vmem:[%s3136_s1 + $0x590] sm:$0xff] }
  0x4c   :  { %572 = vmatprep.subr.mxu0 %v1519_v46  ;;  %444 = vmatmul.mubr.f32.gmra.mxu1 %v2193_v45  ;;  %v1544_v46 = vld [vmem:[%s3136_s1 + $0x580] sm:$0xff]  ;;  %v1538_v52 = vld [vmem:[%s3136_s1 + $0x550] sm:$0xff] }
  0x4d   :  { %573 = vmatpush1.msra.mxu0 %v1518_v50  ;;  %449 = vmatprep.mubr.f32.mxu1 %v2167_v35  ;;  %v1540_v50 = vld [vmem:[%s3136_s1 + $0x560] sm:$0xff] }
  0x4e   :  { %574 = vmatprep.subr.mxu0 %v1517_v55  ;;  %349 = vmatmul.mubr.f32.gmra.mxu0 %v255_v59  ;;  %v1535_v55 = vld [vmem:[%s3136_s1 + $0x538] sm:$0xff]  ;;  %v1532_v59 = vld [vmem:[%s3136_s1 + $0x520] sm:$0xff] }
  0x4f   :  { %575 = vmatpush1.msra.mxu0 %v1516_v57  ;;  %354 = vmatprep.mubr.f32.mxu0 %v261_v63  ;;  %v462_v57 = vld [vmem:[#allocation2] sm:$0xfc]  ;;  %v537_v63 = vrot.slane %v2105_v4, 2 }
  0x50   :  { %576 = vmatprep.subr.mxu0 %v1515_v58  ;;  %450 = vmatmul.mubr.f32.gmra.mxu1 %v2181_v40  ;;  %v1533_v58 = vld [vmem:[%s3136_s1 + $0x528] sm:$0xff] }
  0x51   :  { %577 = vmatpush1.msra.mxu0 %v1514_v62  ;;  %455 = vmatprep.mubr.f32.mxu1 %v99_v5  ;;  %v536_v62 = vrot.slane %v462_v57, 2  ;;  %v1528_v5 = vld [vmem:[%s3136_s1 + $0x500] sm:$0xff]  ;;  %v1575_v57 = vld [vmem:[%s3138_s2 + $0x278] sm:$0xff] }
  0x52   :  { %578 = vmatprep.subr.mxu0 %v1513_v1  ;;  %355 = vmatmul.mubr.f32.gmra.mxu0 %v259_v7  ;;  %v1530_v1 = vld [vmem:[%s3136_s1 + $0x510] sm:$0xff]  ;;  %v548_v7 = vrot.slane %v2167_v35, 2 }
  0x53   :  { %579 = vmatpush1.msra.mxu0 %v1512_v3  ;;  %360 = vmatprep.mubr.f32.mxu0 %v260_v53  ;;  %v1537_v53 = vld [vmem:[%s3136_s1 + $0x548] sm:$0xff]  ;;  %v538_v4 = vsel %vm535_vm4, %v536_v62, %v537_v63  ;;  %v791_v35 = vld [vmem:[%s3138_s2 + $0xf0] sm:$0xff] }
  0x54   :  { %580 = vmatprep.subr.mxu0 %v1511_v6  ;;  %456 = vmatmul.mubr.f32.gmra.mxu1 %v98_v12  ;;  %v1529_v3 = vld [vmem:[%s3136_s1 + $0x508] sm:$0xff]  ;;  %v542_v6 = vrot.slane %v2193_v45, 2  ;;  %v549_v12 = vsel %vm535_vm4, %v544_v2, %v548_v7 }
  0x55   :  { %581 = vmatpush1.msra.mxu0 %v1510_v8  ;;  %v465_v8 = vld [vmem:[#allocation2 + $0x48] sm:$0xf] }
  0x56   :  { %582 = vmatprep.subr.mxu0 %v1509_v11  ;;  %361 = vmatmul.mubr.f32.gmra.mxu0 %v258_v60  ;;  %v1531_v60 = vld [vmem:[%s3136_s1 + $0x518] sm:$0xff]  ;;  %v543_v9 = vsel %vm535_vm4, %v537_v63, %v542_v6  ;;  %v546_v11 = vrot.slane %v2181_v40, 2  ;;  %v790_v45 = vld [vmem:[%s3138_s2 + $0xe8] sm:$0xff]  ;;  %v789_v40 = vld [vmem:[%s3138_s2 + $0xe0] sm:$0xff] }
  0x57   :  { %583 = vmatpush1.msra.mxu0 %v1508_v13  ;;  %628 = vmatprep.mubr.f32.mxu0 %v541_v16  ;;  %v552_v13 = vrot.slane %v465_v8, 2  ;;  %v788_v16 = vld [vmem:[%s3138_s2 + $0xd8] sm:$0xff]  ;;  %v1573_v62 = vld [vmem:[%s3138_s2 + $0x268] sm:$0xff]  ;;  %v767_v63 = vld [vmem:[%s3138_s2 + $0x30] sm:$0xff] }
  0x58   :  { %584 = vmatprep.subr.mxu0 %v1507_v14  ;;  %v464_v14 = vld [vmem:[#allocation2 + $0x40] sm:$0xf]  ;;  %v547_v10 = vsel %vm535_vm4, %v542_v6, %v546_v11  ;;  %v766_v2 = vld [vmem:[%s3138_s2 + $0x28] sm:$0xff]  ;;  %v764_v6 = vld [vmem:[%s3138_s2 + $0x18] sm:$0xff] }
  0x59   :  { %585 = vmatpush1.msra.mxu0 %v1506_v15  ;;  %v550_v15 = vrot.slane %v464_v14, 2  ;;  %v1568_v8 = vld [vmem:[%s3138_s2 + $0x240] sm:$0xff]  ;;  %v824_v14 = vld [vmem:[%s3138_s2 + $0x1f8] sm:$0xff] }
  0x5a   :  { %586 = vmatprep.subr.mxu0 %v1505_v17  ;;  %v1591_v17 = vld [vmem:[%s3138_s2 + $0x2f8] sm:$0xff] }
  0x5b   :  { %587 = vmatpush1.msra.mxu0 %v1504_v18  ;;  %v553_v18 = vsel %vm535_vm4, %v548_v7, %v552_v13  ;;  %932 = vmatprep.subr.mxu1 %v1591_v17  ;;  %v763_v7 = vld [vmem:[%s3138_s2 + $0x10] sm:$0xff]  ;;  %v820_v17 = vld [vmem:[%s3138_s2 + $0x1d8] sm:$0xff] }
  0x5c   :  { %588 = vmatprep.subr.mxu0 %v1503_v19  ;;  %v787_v19 = vld [vmem:[%s3138_s2 + $0xd0] sm:$0xff] }
  0x5d   :  { %589 = vmatpush1.msra.mxu0 %v1502_v20  ;;  %v1590_v20 = vld [vmem:[%s3138_s2 + $0x2f0] sm:$0xff] }
  0x5e   :  { %590 = vmatprep.subr.mxu0 %v1501_v21  ;;  %v786_v21 = vld [vmem:[%s3138_s2 + $0xc8] sm:$0xff]  ;;  %933 = vmatpush1.msra.mxu1 %v1590_v20  ;;  %v1560_v20 = vld [vmem:[%s3138_s2 + $0x200] sm:$0xff] }
  0x5f   :  { %591 = vmatpush1.msra.mxu0 %v1500_v22  ;;  %v1589_v22 = vld [vmem:[%s3138_s2 + $0x2e8] sm:$0xff] }
  0x60   :  { %592 = vmatprep.subr.mxu0 %v1499_v23  ;;  %v785_v23 = vld [vmem:[%s3138_s2 + $0xc0] sm:$0xff]  ;;  %934 = vmatprep.subr.mxu1 %v1589_v22  ;;  %v1623_v22 = vld [vmem:[%s3138_s2 + $0x3f8] sm:$0xff] }
  0x61   :  { %593 = vmatpush1.msra.mxu0 %v1498_v24  ;;  %v1588_v24 = vld [vmem:[%s3138_s2 + $0x2e0] sm:$0xff] }
  0x62   :  { %594 = vmatprep.subr.mxu0 %v1497_v25  ;;  %v551_v25 = vsel %vm535_vm4, %v546_v11, %v550_v15  ;;  %935 = vmatpush1.msra.mxu1 %v1588_v24  ;;  %v1567_v11 = vld [vmem:[%s3138_s2 + $0x238] sm:$0xff]  ;;  %v1622_v24 = vld [vmem:[%s3138_s2 + $0x3f0] sm:$0xff] }
  0x63   :  { %595 = vmatpush1.msra.mxu0 %v1496_v26  ;;  %v784_v26 = vld [vmem:[%s3138_s2 + $0xb8] sm:$0xff] }
  0x64   :  { %596 = vmatprep.subr.mxu0 %v1559_v27  ;;  %v783_v27 = vld [vmem:[%s3138_s2 + $0xb0] sm:$0xff] }
  0x65   :  { %597 = vmatpush2.msra.mxu0 %v1558_v28  ;;  %v782_v28 = vld [vmem:[%s3138_s2 + $0xa8] sm:$0xff] }
  0x66   :  { %598 = vmatprep.subr.mxu0 %v1557_v29  ;;  %v1587_v29 = vld [vmem:[%s3138_s2 + $0x2d8] sm:$0xff] }
  0x67   :  { %599 = vmatpush2.msra.mxu0 %v1556_v30  ;;  %v781_v30 = vld [vmem:[%s3138_s2 + $0xa0] sm:$0xff]  ;;  %936 = vmatprep.subr.mxu1 %v1587_v29  ;;  %v814_v29 = vld [vmem:[%s3138_s2 + $0x1a8] sm:$0xff] }
  0x68   :  { %600 = vmatprep.subr.mxu0 %v1555_v31  ;;  %v1586_v31 = vld [vmem:[%s3138_s2 + $0x2d0] sm:$0xff] }
  0x69   :  { %601 = vmatpush2.msra.mxu0 %v1554_v32  ;;  %v780_v32 = vld [vmem:[%s3138_s2 + $0x98] sm:$0xff]  ;;  %937 = vmatpush1.msra.mxu1 %v1586_v31  ;;  %v813_v31 = vld [vmem:[%s3138_s2 + $0x1a0] sm:$0xff] }
  0x6a   :  { %602 = vmatprep.subr.mxu0 %v1553_v33  ;;  %v1585_v33 = vld [vmem:[%s3138_s2 + $0x2c8] sm:$0xff] }
  0x6b   :  { %603 = vmatpush2.msra.mxu0 %v1552_v34  ;;  %v779_v34 = vld [vmem:[%s3138_s2 + $0x90] sm:$0xff]  ;;  %938 = vmatprep.subr.mxu1 %v1585_v33  ;;  %v1617_v33 = vld [vmem:[%s3138_s2 + $0x3c8] sm:$0xff] }
  0x6c   :  { %604 = vmatprep.subr.mxu0 %v1551_v36  ;;  %v1584_v36 = vld [vmem:[%s3138_s2 + $0x2c0] sm:$0xff] }
  0x6d   :  { %605 = vmatpush2.msra.mxu0 %v1550_v37  ;;  %v778_v37 = vld [vmem:[%s3138_s2 + $0x88] sm:$0xff]  ;;  %939 = vmatpush1.msra.mxu1 %v1584_v36  ;;  %v1615_v36 = vld [vmem:[%s3138_s2 + $0x3b8] sm:$0xff] }
  0x6e   :  { %606 = vmatprep.subr.mxu0 %v1549_v38  ;;  %v1583_v38 = vld [vmem:[%s3138_s2 + $0x2b8] sm:$0xff] }
  0x6f   :  { %607 = vmatpush2.msra.mxu0 %v1548_v39  ;;  %v777_v39 = vld [vmem:[%s3138_s2 + $0x80] sm:$0xff]  ;;  %940 = vmatprep.subr.mxu1 %v1583_v38  ;;  %v812_v38 = vld [vmem:[%s3138_s2 + $0x198] sm:$0xff] }
  0x70   :  { %608 = vmatprep.subr.mxu0 %v1547_v41  ;;  %v1582_v41 = vld [vmem:[%s3138_s2 + $0x2b0] sm:$0xff] }
  0x71   :  { %609 = vmatpush2.msra.mxu0 %v1546_v43  ;;  %v776_v43 = vld [vmem:[%s3138_s2 + $0x78] sm:$0xff]  ;;  %941 = vmatpush1.msra.mxu1 %v1582_v41  ;;  %v811_v41 = vld [vmem:[%s3138_s2 + $0x190] sm:$0xff] }
  0x72   :  { %610 = vmatprep.subr.mxu0 %v1545_v44  ;;  %v1581_v44 = vld [vmem:[%s3138_s2 + $0x2a8] sm:$0xff] }
  0x73   :  { %611 = vmatpush2.msra.mxu0 %v1544_v46  ;;  %v775_v46 = vld [vmem:[%s3138_s2 + $0x70] sm:$0xff]  ;;  %942 = vmatprep.subr.mxu1 %v1581_v44  ;;  %v810_v44 = vld [vmem:[%s3138_s2 + $0x188] sm:$0xff] }
  0x74   :  { %612 = vmatprep.subr.mxu0 %v1543_v47  ;;  %v1580_v47 = vld [vmem:[%s3138_s2 + $0x2a0] sm:$0xff] }
  0x75   :  { %613 = vmatpush2.msra.mxu0 %v1542_v48  ;;  %v774_v48 = vld [vmem:[%s3138_s2 + $0x68] sm:$0xff]  ;;  %943 = vmatpush1.msra.mxu1 %v1580_v47  ;;  %v809_v47 = vld [vmem:[%s3138_s2 + $0x180] sm:$0xff] }
  0x76   :  { %614 = vmatprep.subr.mxu0 %v1541_v49  ;;  %v1579_v49 = vld [vmem:[%s3138_s2 + $0x298] sm:$0xff] }
  0x77   :  { %615 = vmatpush2.msra.mxu0 %v1540_v50  ;;  %v773_v50 = vld [vmem:[%s3138_s2 + $0x60] sm:$0xff]  ;;  %944 = vmatprep.subr.mxu1 %v1579_v49  ;;  %v808_v49 = vld [vmem:[%s3138_s2 + $0x178] sm:$0xff] }
  0x78   :  { %616 = vmatprep.subr.mxu0 %v1539_v51  ;;  %v1578_v51 = vld [vmem:[%s3138_s2 + $0x290] sm:$0xff] }
  0x79   :  { %617 = vmatpush2.msra.mxu0 %v1538_v52  ;;  %v772_v52 = vld [vmem:[%s3138_s2 + $0x58] sm:$0xff]  ;;  %945 = vmatpush1.msra.mxu1 %v1578_v51  ;;  %v807_v51 = vld [vmem:[%s3138_s2 + $0x170] sm:$0xff] }
  0x7a   :  { %618 = vmatprep.subr.mxu0 %v1537_v53  ;;  %v1577_v53 = vld [vmem:[%s3138_s2 + $0x288] sm:$0xff] }
  0x7b   :  { %619 = vmatpush2.msra.mxu0 %v1536_v54  ;;  %v771_v54 = vld [vmem:[%s3138_s2 + $0x50] sm:$0xff]  ;;  %946 = vmatprep.subr.mxu1 %v1577_v53  ;;  %v806_v53 = vld [vmem:[%s3138_s2 + $0x168] sm:$0xff] }
  0x7c   :  { %620 = vmatprep.subr.mxu0 %v1535_v55  ;;  %v1576_v55 = vld [vmem:[%s3138_s2 + $0x280] sm:$0xff] }
  0x7d   :  { %621 = vmatpush2.msra.mxu0 %v1534_v56  ;;  %v770_v56 = vld [vmem:[%s3138_s2 + $0x48] sm:$0xff]  ;;  %947 = vmatpush1.msra.mxu1 %v1576_v55  ;;  %v805_v55 = vld [vmem:[%s3138_s2 + $0x160] sm:$0xff] }
  0x7e   :  { %622 = vmatprep.subr.mxu0 %v1533_v58  ;;  %v769_v58 = vld [vmem:[%s3138_s2 + $0x40] sm:$0xff]  ;;  %948 = vmatprep.subr.mxu1 %v1575_v57  ;;  %v1606_v57 = vld [vmem:[%s3138_s2 + $0x370] sm:$0xff] }
  0x7f   :  { %623 = vmatpush2.msra.mxu0 %v1532_v59  ;;  %v1574_v59 = vld [vmem:[%s3138_s2 + $0x270] sm:$0xff] }
  0x80   :  { %624 = vmatprep.subr.mxu0 %v1531_v60  ;;  %v768_v60 = vld [vmem:[%s3138_s2 + $0x38] sm:$0xff]  ;;  %949 = vmatpush1.msra.mxu1 %v1574_v59  ;;  %v1605_v59 = vld [vmem:[%s3138_s2 + $0x368] sm:$0xff] }
  0x81   :  { %625 = vmatpush2.msra.mxu0 %v1530_v1  ;;  %v1572_v1 = vld [vmem:[%s3138_s2 + $0x260] sm:$0xff]  ;;  %950 = vmatprep.subr.mxu1 %v1573_v62 }
  0x82   :  { %626 = vmatprep.subr.mxu0 %v1529_v3  ;;  %v1571_v3 = vld [vmem:[%s3138_s2 + $0x258] sm:$0xff]  ;;  %951 = vmatpush1.msra.mxu1 %v1572_v1  ;;  %v1604_v62 = vld [vmem:[%s3138_s2 + $0x360] sm:$0xff] }
  0x83   :  { %627 = vmatpush2.msra.mxu0 %v1528_v5  ;;  %v765_v5 = vld [vmem:[%s3138_s2 + $0x20] sm:$0xff]  ;;  %952 = vmatprep.subr.mxu1 %v1571_v3  ;;  %v1603_v1 = vld [vmem:[%s3138_s2 + $0x358] sm:$0xff] }
  0x84   :  { %629 = vmatmul.mubr.f32.vlgmr.msra.gmra.mxu0 %v538_v4  ;;  %1027 = vmatprep.subr.mxu0 %v792_v61  ;;  %v1570_v4 = vld [vmem:[%s3138_s2 + $0x250] sm:$0xff]  ;;  %v1565_v61 = vld [vmem:[%s3138_s2 + $0x228] sm:$0xff]  ;;  %v800_v3 = vld [vmem:[%s3138_s2 + $0x138] sm:$0xff] }
  0x85   :  { %634 = vmatprep.mubr.f32.mxu0 %v545_v42  ;;  %1028 = vmatpush1.msra.mxu0 %v791_v35  ;;  %v1569_v42 = vld [vmem:[%s3138_s2 + $0x248] sm:$0xff]  ;;  %v823_v35 = vld [vmem:[%s3138_s2 + $0x1f0] sm:$0xff] }
  0x86   :  { %1029 = vmatprep.subr.mxu0 %v790_v45  ;;  %953 = vmatpush1.msra.mxu1 %v1570_v4  ;;  %v1564_v45 = vld [vmem:[%s3138_s2 + $0x220] sm:$0xff]  ;;  %v799_v4 = vld [vmem:[%s3138_s2 + $0x130] sm:$0xff] }
  0x87   :  { %1030 = vmatpush1.msra.mxu0 %v789_v40  ;;  %954 = vmatprep.subr.mxu1 %v1569_v42  ;;  %v822_v40 = vld [vmem:[%s3138_s2 + $0x1e8] sm:$0xff] }
  0x88   :  { %635 = vmatmul.mubr.f32.gmra.mxu0 %v543_v9  ;;  %1031 = vmatprep.subr.mxu0 %v788_v16  ;;  %v762_v9 = vld [vmem:[%s3138_s2 + $0x8] sm:$0xff]  ;;  %v1562_v16 = vld [vmem:[%s3138_s2 + $0x210] sm:$0xff] }
  0x89   :  { %640 = vmatprep.mubr.f32.mxu0 %v549_v12  ;;  %1032 = vmatpush1.msra.mxu0 %v787_v19  ;;  %v761_v12 = vld [vmem:[%s3138_s2] sm:$0xff]  ;;  %v819_v19 = vld [vmem:[%s3138_s2 + $0x1d0] sm:$0xff]  ;;  %v798_v42 = vld [vmem:[%s3138_s2 + $0x128] sm:$0xff] }
  0x8a   :  { %1033 = vmatprep.subr.mxu0 %v786_v21  ;;  %955 = vmatpush1.msra.mxu1 %v1568_v8  ;;  %v818_v21 = vld [vmem:[%s3138_s2 + $0x1c8] sm:$0xff]  ;;  %v797_v8 = vld [vmem:[%s3138_s2 + $0x120] sm:$0xff] }
  0x8b   :  { %1034 = vmatpush1.msra.mxu0 %v785_v23  ;;  %956 = vmatprep.subr.mxu1 %v1567_v11  ;;  %v817_v23 = vld [vmem:[%s3138_s2 + $0x1c0] sm:$0xff]  ;;  %v796_v11 = vld [vmem:[%s3138_s2 + $0x118] sm:$0xff] }
  0x8c   :  { %641 = vmatmul.mubr.f32.gmra.mxu0 %v547_v10  ;;  %1035 = vmatprep.subr.mxu0 %v784_v26  ;;  %v1563_v10 = vld [vmem:[%s3138_s2 + $0x218] sm:$0xff]  ;;  %v1621_v26 = vld [vmem:[%s3138_s2 + $0x3e8] sm:$0xff] }
  0x8d   :  { %646 = vmatprep.mubr.f32.mxu0 %v553_v18  ;;  %1036 = vmatpush1.msra.mxu0 %v783_v27  ;;  %v1561_v18 = vld [vmem:[%s3138_s2 + $0x208] sm:$0xff]  ;;  %v815_v27 = vld [vmem:[%s3138_s2 + $0x1b0] sm:$0xff] }
  0x8e   :  { %1037 = vmatprep.subr.mxu0 %v782_v28  ;;  %v1620_v28 = vld [vmem:[%s3138_s2 + $0x3e0] sm:$0xff] }
  0x8f   :  { %1038 = vmatpush1.msra.mxu0 %v781_v30  ;;  %v1619_v30 = vld [vmem:[%s3138_s2 + $0x3d8] sm:$0xff] }
  0x90   :  { %647 = vmatmul.mubr.f32.gmra.mxu0 %v551_v25  ;;  %1039 = vmatprep.subr.mxu0 %v780_v32  ;;  %v816_v25 = vld [vmem:[%s3138_s2 + $0x1b8] sm:$0xff]  ;;  %v1618_v32 = vld [vmem:[%s3138_s2 + $0x3d0] sm:$0xff] }
  0x91   :  { %652 = vmatprep.mubr.f32.mxu0 %v552_v13  ;;  %1040 = vmatpush1.msra.mxu0 %v779_v34  ;;  %v1566_v13 = vld [vmem:[%s3138_s2 + $0x230] sm:$0xff]  ;;  %v1616_v34 = vld [vmem:[%s3138_s2 + $0x3c0] sm:$0xff] }
  0x92   :  { %1041 = vmatprep.subr.mxu0 %v778_v37  ;;  %957 = vmatpush1.msra.mxu1 %v1566_v13  ;;  %v1614_v37 = vld [vmem:[%s3138_s2 + $0x3b0] sm:$0xff] }
  0x93   :  { %1042 = vmatpush1.msra.mxu0 %v777_v39  ;;  %958 = vmatprep.subr.mxu1 %v1565_v61  ;;  %v1613_v39 = vld [vmem:[%s3138_s2 + $0x3a8] sm:$0xff]  ;;  %v795_v13 = vld [vmem:[%s3138_s2 + $0x110] sm:$0xff] }
  0x94   :  { %653 = vmatmul.mubr.f32.gmra.mxu0 %v550_v15  ;;  %1043 = vmatprep.subr.mxu0 %v776_v43  ;;  %v821_v15 = vld [vmem:[%s3138_s2 + $0x1e0] sm:$0xff]  ;;  %v794_v61 = vld [vmem:[%s3138_s2 + $0x108] sm:$0xff] }
  0x95   :  { %1044 = vmatpush1.msra.mxu0 %v775_v46  ;;  %959 = vmatpush1.msra.mxu1 %v1564_v45  ;;  %v1612_v43 = vld [vmem:[%s3138_s2 + $0x3a0] sm:$0xff]  ;;  %v1611_v46 = vld [vmem:[%s3138_s2 + $0x398] sm:$0xff] }
  0x96   :  { %1045 = vmatprep.subr.mxu0 %v774_v48  ;;  %960 = vmatprep.subr.mxu1 %v1563_v10  ;;  %v1610_v48 = vld [vmem:[%s3138_s2 + $0x390] sm:$0xff]  ;;  %v793_v45 = vld [vmem:[%s3138_s2 + $0x100] sm:$0xff]  ;;  %v1593_v10 = vld [vmem:[%s3138_s2 + $0x308] sm:$0xff] }
  0x97   :  { %1046 = vmatpush1.msra.mxu0 %v773_v50  ;;  %961 = vmatpush1.msra.mxu1 %v1562_v16  ;;  %v1609_v50 = vld [vmem:[%s3138_s2 + $0x388] sm:$0xff]  ;;  %v1655_v16 = vld [vmem:[%s3138_s2 + $0x4f8] sm:$0xff] }
  0x98   :  { %1047 = vmatprep.subr.mxu0 %v772_v52  ;;  %962 = vmatprep.subr.mxu1 %v1561_v18  ;;  %v1608_v52 = vld [vmem:[%s3138_s2 + $0x380] sm:$0xff] }
  0x99   :  { %1048 = vmatpush1.msra.mxu0 %v771_v54  ;;  %963 = vmatpush1.msra.mxu1 %v1560_v20  ;;  %v1607_v54 = vld [vmem:[%s3138_s2 + $0x378] sm:$0xff] }
  0x9a   :  { %1049 = vmatprep.subr.mxu0 %v770_v56  ;;  %964 = vmatprep.subr.mxu1 %v1623_v22  ;;  %v804_v56 = vld [vmem:[%s3138_s2 + $0x158] sm:$0xff] }
  0x9b   :  { %1050 = vmatpush1.msra.mxu0 %v769_v58  ;;  %965 = vmatpush2.msra.mxu1 %v1622_v24  ;;  %v803_v58 = vld [vmem:[%s3138_s2 + $0x150] sm:$0xff] }
  0x9c   :  { %1051 = vmatprep.subr.mxu0 %v768_v60  ;;  %966 = vmatprep.subr.mxu1 %v1621_v26  ;;  %v802_v60 = vld [vmem:[%s3138_s2 + $0x148] sm:$0xff] }
  0x9d   :  { %1052 = vmatpush1.msra.mxu0 %v767_v63  ;;  %967 = vmatpush2.msra.mxu1 %v1620_v28  ;;  %v801_v63 = vld [vmem:[%s3138_s2 + $0x140] sm:$0xff] }
  0x9e   :  { %1053 = vmatprep.subr.mxu0 %v766_v2  ;;  %968 = vmatprep.subr.mxu1 %v1619_v30  ;;  %v1602_v2 = vld [vmem:[%s3138_s2 + $0x350] sm:$0xff] }
  0x9f   :  { %1054 = vmatpush1.msra.mxu0 %v765_v5  ;;  %969 = vmatpush2.msra.mxu1 %v1618_v32  ;;  %v1601_v5 = vld [vmem:[%s3138_s2 + $0x348] sm:$0xff] }
  0xa0   :  { %1055 = vmatprep.subr.mxu0 %v764_v6  ;;  %970 = vmatprep.subr.mxu1 %v1617_v33  ;;  %v1600_v6 = vld [vmem:[%s3138_s2 + $0x340] sm:$0xff] }
  0xa1   :  { %1056 = vmatpush1.msra.mxu0 %v763_v7  ;;  %971 = vmatpush2.msra.mxu1 %v1616_v34  ;;  %v1599_v7 = vld [vmem:[%s3138_s2 + $0x338] sm:$0xff]  ;;  %v669_v33 = vld [vmem:[%s3139_s3] sm:$0x3] }
  0xa2   :  { %1057 = vmatprep.subr.mxu0 %v762_v9  ;;  %972 = vmatprep.subr.mxu1 %v1615_v36  ;;  %v1598_v9 = vld [vmem:[%s3138_s2 + $0x330] sm:$0xff] }
  0xa3   :  { %1058 = vmatpush1.msra.mxu0 %v761_v12  ;;  %973 = vmatpush2.msra.mxu1 %v1614_v37  ;;  %v1597_v12 = vld [vmem:[%s3138_s2 + $0x328] sm:$0xff] }
  0xa4   :  { %1059 = vmatprep.subr.mxu0 %v824_v14  ;;  %974 = vmatprep.subr.mxu1 %v1613_v39  ;;  %v1596_v14 = vld [vmem:[%s3138_s2 + $0x320] sm:$0xff] }
  0xa5   :  { %1060 = vmatpush2.msra.mxu0 %v823_v35  ;;  %975 = vmatpush2.msra.mxu1 %v1612_v43  ;;  %v1595_v35 = vld [vmem:[%s3138_s2 + $0x318] sm:$0xff] }
  0xa6   :  { %1061 = vmatprep.subr.mxu0 %v822_v40  ;;  %976 = vmatprep.subr.mxu1 %v1611_v46  ;;  %v1594_v40 = vld [vmem:[%s3138_s2 + $0x310] sm:$0xff] }
  0xa7   :  { %1062 = vmatpush2.msra.mxu0 %v821_v15  ;;  %977 = vmatpush2.msra.mxu1 %v1610_v48  ;;  %v1592_v15 = vld [vmem:[%s3138_s2 + $0x300] sm:$0xff] }
  0xa8   :  { %1063 = vmatprep.subr.mxu0 %v820_v17  ;;  %978 = vmatprep.subr.mxu1 %v1609_v50 }
  0xa9   :  { %1064 = vmatpush2.msra.mxu0 %v819_v19  ;;  %979 = vmatpush2.msra.mxu1 %v1608_v52 }
  0xaa   :  { %1065 = vmatprep.subr.mxu0 %v818_v21  ;;  %980 = vmatprep.subr.mxu1 %v1607_v54 }
  0xab   :  { %1066 = vmatpush2.msra.mxu0 %v817_v23  ;;  %981 = vmatpush2.msra.mxu1 %v1606_v57 }
  0xac   :  { %1067 = vmatprep.subr.mxu0 %v816_v25  ;;  %982 = vmatprep.subr.mxu1 %v1605_v59 }
  0xad   :  { %1068 = vmatpush2.msra.mxu0 %v815_v27  ;;  %983 = vmatpush2.msra.mxu1 %v1604_v62 }
  0xae   :  { %1069 = vmatprep.subr.mxu0 %v814_v29  ;;  %984 = vmatprep.subr.mxu1 %v1603_v1  ;;  %v2785_v29 = vshrl.u32 %v24_v0, 7 }
  0xaf   :  { %1070 = vmatpush2.msra.mxu0 %v813_v31  ;;  %985 = vmatpush2.msra.mxu1 %v1602_v2 }
  0xb0   :  { %1071 = vmatprep.subr.mxu0 %v812_v38  ;;  %986 = vmatprep.subr.mxu1 %v1601_v5  ;;  %v673_v32 = vsub.s32 0, %v2785_v29  ;;  %v677_v34 = vsub.s32 1, %v2785_v29 }
  0xb1   :  { %1072 = vmatpush2.msra.mxu0 %v811_v41  ;;  %987 = vmatpush2.msra.mxu1 %v1600_v6 }
  0xb2   :  { %1073 = vmatprep.subr.mxu0 %v810_v44  ;;  %988 = vmatprep.subr.mxu1 %v1599_v7  ;;  %v2794_v39 = vrot.slane %v669_v33, %v673_v32  ;;  %v2798_v44 = vrot.slane %v669_v33, %v677_v34 }
  0xb3   :  { %1074 = vmatpush2.msra.mxu0 %v809_v47  ;;  %989 = vmatpush2.msra.mxu1 %v1598_v9 }
  0xb4   :  { %1075 = vmatprep.subr.mxu0 %v808_v49  ;;  %990 = vmatprep.subr.mxu1 %v1597_v12 }
  0xb5   :  { %1076 = vmatpush2.msra.mxu0 %v807_v51  ;;  %991 = vmatpush2.msra.mxu1 %v1596_v14 }
  0xb6   :  { %1077 = vmatprep.subr.mxu0 %v806_v53  ;;  %992 = vmatprep.subr.mxu1 %v1595_v35 }
  0xb7   :  { %1078 = vmatpush2.msra.mxu0 %v805_v55  ;;  %993 = vmatpush2.msra.mxu1 %v1594_v40 }
  0xb8   :  { %1079 = vmatprep.subr.mxu0 %v804_v56  ;;  %994 = vmatprep.subr.mxu1 %v1593_v10 }
  0xb9   :  { %1080 = vmatpush2.msra.mxu0 %v803_v58  ;;  %995 = vmatpush2.msra.mxu1 %v1592_v15 }
  0xba   :  { %1081 = vmatprep.subr.mxu0 %v802_v60  ;;  %1223 = vmatprep.subr.mxu1 %v1655_v16 }
  0xbb   :  { %1082 = vmatpush2.msra.mxu0 %v801_v63 }
  0xbc   :  { %1083 = vmatprep.subr.mxu0 %v800_v3 }
  0xbd   :  { %1084 = vmatpush2.msra.mxu0 %v799_v4 }
  0xbe   :  { %1085 = vmatprep.subr.mxu0 %v798_v42 }
  0xbf   :  { %1086 = vmatpush2.msra.mxu0 %v797_v8 }
  0xc0   :  { %1087 = vmatprep.subr.mxu0 %v796_v11 }
  0xc1   :  { %1088 = vmatpush2.msra.mxu0 %v795_v13 }
  0xc2   :  { %1089 = vmatprep.subr.mxu0 %v794_v61 }
  0xc3   :  { %1090 = vmatpush2.msra.mxu0 %v793_v45 }
 0x103   :  { %v338_v17 = vpop.f32.mrf.mxu0 }
 0x104   :  { %v433_v22 = vpop.f32.mrf.mxu1 }
 0x105   :  { %v340_v18 = vpop.f32.mrf.mxu0  ;;  %v434_v38 = vadd.f32 %v433_v22, %v338_v17 }
 0x106   :  { %v435_v24 = vpop.f32.mrf.mxu1 }
 0x107   :  { %v436_v0 = vadd.f32 %v435_v24, %v340_v18 }
 0x108   :  { %v439_v25 = vpop.f32.mrf.mxu1 }
 0x10a   :  { %v344_v19 = vpop.f32.mrf.mxu0  ;;  %v441_v27 = vpop.f32.mrf.mxu1 }
 0x10b   :  { %v440_v48 = vadd.f32 %v439_v25, %v344_v19 }
 0x10c   :  { %v346_v20 = vpop.f32.mrf.mxu0  ;;  %v445_v30 = vpop.f32.mrf.mxu1 }
 0x10d   :  { %v442_v52 = vadd.f32 %v441_v27, %v346_v20 }
 0x10e   :  { %v350_v21 = vpop.f32.mrf.mxu0  ;;  %v447_v36 = vpop.f32.mrf.mxu1 }
 0x10f   :  { %v446_v56 = vadd.f32 %v445_v30, %v350_v21 }
 0x110   :  { %v352_v23 = vpop.f32.mrf.mxu0  ;;  %v451_v46 = vpop.f32.mrf.mxu1 }
 0x111   :  { %v448_v1 = vadd.f32 %v447_v36, %v352_v23 }
 0x112   :  { %v356_v26 = vpop.f32.mrf.mxu0  ;;  %v453_v57 = vpop.f32.mrf.mxu1 }
 0x113   :  { %v452_v13 = vadd.f32 %v451_v46, %v356_v26 }
 0x114   :  { %v358_v28 = vpop.f32.mrf.mxu0  ;;  %v457_v42 = vpop.f32.mrf.mxu1 }
 0x115   :  { %v454_v14 = vadd.f32 %v453_v57, %v358_v28  ;;  %v1653_v57 = vld [vmem:[%s3138_s2 + $0x4e8] sm:$0xff] }
 0x116   :  { %v362_v31 = vpop.f32.mrf.mxu0  ;;  %v459_v16 = vpop.f32.mrf.mxu1 }
 0x117   :  { %v458_v15 = vadd.f32 %v457_v42, %v362_v31 }
 0x118   :  { %v364_v37 = vpop.f32.mrf.mxu0 }
 0x119   :  { %v460_v26 = vadd.f32 %v459_v16, %v364_v37 }
 0x144   :  { %v630_v41 = vpop.f32.mrf.mxu0 }
 0x145   :  { %v659_v43 = vadd.f32 %v630_v41, %v434_v38 }
 0x146   :  { %v632_v47 = vpop.f32.mrf.mxu0 }
 0x147   :  { %v681_v49 = vadd.f32 %v2794_v39, %v659_v43  ;;  %v660_v50 = vadd.f32 %v632_v47, %v436_v0 }
 0x148   :  { %v636_v51 = vpop.f32.mrf.mxu0 }
 0x149   :  { %v685_v53 = vmax.f32 %v681_v49, 0.0  ;;  %v682_v54 = vadd.f32 %v2798_v44, %v660_v50  ;;  %v661_v55 = vadd.f32 %v636_v51, %v440_v48 }
 0x14a   :  { %v638_v58 = vpop.f32.mrf.mxu0 }
 0x14b   :  { %v693_v59 = vrot.slane %v685_v53, 7  ;;  %v686_v60 = vmax.f32 %v682_v54, 0.0  ;;  %v683_v62 = vadd.f32 %v2794_v39, %v661_v55  ;;  %v662_v63 = vadd.f32 %v638_v58, %v442_v52 }
 0x14c   :  { %v642_v2 = vpop.f32.mrf.mxu0 }
 0x14d   :  { %705 = vst [vmem:[#allocation2] sm:$0xfe] %v693_v59  ;;  %v694_v3 = vrot.slane %v686_v60, 7  ;;  %v687_v5 = vmax.f32 %v683_v62, 0.0  ;;  %v684_v4 = vadd.f32 %v2798_v44, %v662_v63  ;;  %v663_v6 = vadd.f32 %v642_v2, %v446_v56  ;;  %v1652_v60 = vld [vmem:[%s3138_s2 + $0x4e0] sm:$0xff]  ;;  %v1651_v63 = vld [vmem:[%s3138_s2 + $0x4d8] sm:$0xff] }
 0x14e   :  { %v644_v7 = vpop.f32.mrf.mxu0 }
 0x14f   :  { %706 = vst [vmem:[#allocation2 + $0x8] sm:$0xfe] %v694_v3  ;;  %v695_v8 = vrot.slane %v687_v5, 7  ;;  %v688_v9 = vmax.f32 %v684_v4, 0.0  ;;  %v711_v11 = vadd.f32 %v2794_v39, %v663_v6  ;;  %v664_v12 = vadd.f32 %v644_v7, %v448_v1  ;;  %v1649_v6 = vld [vmem:[%s3138_s2 + $0x4c8] sm:$0xff] }
 0x150   :  { %v648_v61 = vpop.f32.mrf.mxu0 }
 0x151   :  { %v2806_v35 = vsel %vm37_vm1, %v693_v59, %v695_v8  ;;  %709 = vst [vmem:[#allocation2 + $0x20] sm:$0x1] %v695_v8  ;;  %v697_v45 = vrot.slane %v688_v9, 7  ;;  %v717_v40 = vmax.f32 %v711_v11, 0.0  ;;  %v712_v10 = vadd.f32 %v2798_v44, %v664_v12  ;;  %v1648_v8 = vld [vmem:[%s3138_s2 + $0x4c0] sm:$0xff]  ;;  %v1647_v9 = vld [vmem:[%s3138_s2 + $0x4b8] sm:$0xff] }
 0x152   :  { %v665_v17 = vadd.f32 %v648_v61, %v452_v13  ;;  %v650_v18 = vpop.f32.mrf.mxu0  ;;  %v905_v50 = vrot.slane %v2806_v35, 1 }
 0x153   :  { %v2810_v19 = vsel %vm37_vm1, %v694_v3, %v697_v45  ;;  %710 = vst [vmem:[#allocation2 + $0x28] sm:$0x1] %v697_v45  ;;  %v729_v20 = vrot.slane %v717_v40, 7  ;;  %v718_v21 = vmax.f32 %v712_v10, 0.0  ;;  %v666_v22 = vadd.f32 %v650_v18, %v454_v14  ;;  %v1650_v3 = vld [vmem:[%s3138_s2 + $0x4d0] sm:$0xff]  ;;  %v1645_v45 = vld [vmem:[%s3138_s2 + $0x4a8] sm:$0xff] }
 0x154   :  { %v713_v23 = vadd.f32 %v2794_v39, %v665_v17  ;;  %v654_v24 = vpop.f32.mrf.mxu0  ;;  %v825_v25 = vld [vmem:[#allocation2] sm:$0xfe]  ;;  %v908_v38 = vrot.slane %v2810_v19, 1  ;;  %v1646_v14 = vld [vmem:[%s3138_s2 + $0x4b0] sm:$0xff]  ;;  %v1643_v17 = vld [vmem:[%s3138_s2 + $0x498] sm:$0xff] }
 0x155   :  { %745 = vst [vmem:[#allocation2 + $0x20] sm:$0xf8] %v729_v20  ;;  %v730_v27 = vrot.slane %v718_v21, 7  ;;  %v714_v28 = vadd.f32 %v2798_v44, %v666_v22  ;;  %v667_v30 = vadd.f32 %v654_v24, %v458_v15  ;;  %v904_v0 = vrot.slane %v825_v25, 1  ;;  %v751_v48 = vld [vmem:[#allocation2] sm:$0xff]  ;;  %v1642_v22 = vld [vmem:[%s3138_s2 + $0x490] sm:$0xff] }
 0x156   :  { %v719_v31 = vmax.f32 %v713_v23, 0.0  ;;  %v656_v33 = vpop.f32.mrf.mxu0  ;;  %v752_v36 = vld [vmem:[#allocation2 + $0x8] sm:$0xff]  ;;  %v1644_v10 = vld [vmem:[%s3138_s2 + $0x4a0] sm:$0xff] }
 0x157   :  { %v826_v41 = vld [vmem:[#allocation2 + $0x8] sm:$0xfe]  ;;  %746 = vst [vmem:[#allocation2 + $0x28] sm:$0xf8] %v730_v27  ;;  %v720_v43 = vmax.f32 %v714_v28, 0.0  ;;  %v715_v46 = vadd.f32 %v2794_v39, %v667_v30  ;;  %v668_v47 = vadd.f32 %v656_v33, %v460_v26  ;;  %1091 = vmatprep.mubr.f32.mxu0 %v752_v36  ;;  %v1654_v39 = vld [vmem:[%s3138_s2 + $0x4f0] sm:$0xff]  ;;  %v906_v56 = vsel %vm243_vm2, %v904_v0, %v905_v50 }
 0x158   :  { %v907_v37 = vrot.slane %v826_v41, 1  ;;  %v731_v49 = vrot.slane %v719_v31, 7  ;;  %1092 = vmatmul.mubr.f32.vlgmr.msra.gmra.mxu0 %v751_v48  ;;  %v1641_v25 = vld [vmem:[%s3138_s2 + $0x488] sm:$0xff]  ;;  %v1640_v28 = vld [vmem:[%s3138_s2 + $0x480] sm:$0xff]  ;;  %v1639_v31 = vld [vmem:[%s3138_s2 + $0x478] sm:$0xff]  ;;  %v1199_v41 = vrot.slane %v2810_v19, 2 }
 0x159   :  { %v733_v51 = vrot.slane %v720_v43, 7  ;;  %v721_v52 = vmax.f32 %v715_v46, 0.0  ;;  %v716_v53 = vadd.f32 %v2798_v44, %v668_v47  ;;  %1097 = vmatprep.mubr.f32.mxu0 %v2810_v19  ;;  %v1123_v26 = vld [vmem:[#allocation2 + $0x8] sm:$0xfc]  ;;  %v1638_v33 = vld [vmem:[%s3138_s2 + $0x470] sm:$0xff]  ;;  %v1636_v0 = vld [vmem:[%s3138_s2 + $0x460] sm:$0xff] }
 0x15a   :  { %v909_v54 = vsel %vm243_vm2, %v907_v37, %v908_v38  ;;  %v2824_v55 = vsel %vm37_vm1, %v729_v20, %v731_v49  ;;  %v1198_v36 = vrot.slane %v1123_v26, 2  ;;  %v1635_v43 = vld [vmem:[%s3138_s2 + $0x458] sm:$0xff]  ;;  %v1634_v47 = vld [vmem:[%s3138_s2 + $0x450] sm:$0xff]  ;;  %v1633_v48 = vld [vmem:[%s3138_s2 + $0x448] sm:$0xff] }
 0x15b   :  { %996 = vmatprep.mubr.f32.mxu1 %v909_v54  ;;  %v2831_v44 = vsel %vm37_vm1, %v730_v27, %v733_v51  ;;  %v735_v58 = vrot.slane %v721_v52, 7  ;;  %v722_v59 = vmax.f32 %v716_v53, 0.0  ;;  %v914_v40 = vrot.slane %v2824_v55, 1  ;;  %v1632_v37 = vld [vmem:[%s3138_s2 + $0x440] sm:$0xff]  ;;  %v1627_v53 = vld [vmem:[%s3138_s2 + $0x418] sm:$0xff]  ;;  %v1626_v54 = vld [vmem:[%s3138_s2 + $0x410] sm:$0xff] }
 0x15c   :  { %997 = vmatmul.mubr.f32.vlgmr.msra.gmra.mxu1 %v906_v56  ;;  %1098 = vmatmul.mubr.f32.gmra.mxu0 %v2806_v35  ;;  %v2837_v62 = vld [vmem:[#allocation2 + $0x20] sm:$0xff]  ;;  %v916_v12 = vrot.slane %v2831_v44, 1  ;;  %v1200_v46 = vsel %vm535_vm4, %v1198_v36, %v1199_v41 }
 0x15d   :  { %1224 = vmatpush1.msra.mxu1 %v1654_v39  ;;  %v736_v1 = vsel %vm37_vm1, %v731_v49, %v735_v58  ;;  %v737_v2 = vrot.slane %v722_v59, 7  ;;  %v910_v4 = vrot.slane %v2837_v62, 1  ;;  %v1631_v49 = vld [vmem:[%s3138_s2 + $0x438] sm:$0xff]  ;;  %v1628_v52 = vld [vmem:[%s3138_s2 + $0x420] sm:$0xff]  ;;  %v1625_v39 = vld [vmem:[%s3138_s2 + $0x408] sm:$0xff] }
 0x15e   :  { %1225 = vmatprep.subr.mxu1 %v1653_v57  ;;  %749 = vst [vmem:[#allocation2 + $0x40] sm:$0x7] %v736_v1  ;;  %v2846_v5 = vld [vmem:[#allocation2 + $0x28] sm:$0xff]  ;;  %v1624_v56 = vld [vmem:[%s3138_s2 + $0x400] sm:$0xff]  ;;  %v1687_v57 = vld [vmem:[%s3138_s2 + $0x5f8] sm:$0xff] }
 0x15f   :  { %1226 = vmatpush1.msra.mxu1 %v1652_v60  ;;  %v738_v42 = vsel %vm37_vm1, %v733_v51, %v737_v2  ;;  %v912_v7 = vrot.slane %v2846_v5, 1  ;;  %1103 = vmatprep.mubr.f32.mxu0 %v2846_v5  ;;  %v911_v13 = vsel %vm243_vm2, %v905_v50, %v910_v4  ;;  %v915_v16 = vsel %vm243_vm2, %v910_v4, %v914_v40  ;;  %v1630_v50 = vld [vmem:[%s3138_s2 + $0x430] sm:$0xff]  ;;  %v1629_v51 = vld [vmem:[%s3138_s2 + $0x428] sm:$0xff]  ;;  %v1684_v60 = vld [vmem:[%s3138_s2 + $0x5e0] sm:$0xff] }
 0x160   :  { %1227 = vmatprep.subr.mxu1 %v1651_v63  ;;  %750 = vst [vmem:[#allocation2 + $0x48] sm:$0x7] %v738_v42  ;;  %1104 = vmatmul.mubr.f32.gmra.mxu0 %v2837_v62  ;;  %v1686_v58 = vld [vmem:[%s3138_s2 + $0x5f0] sm:$0xff]  ;;  %v1685_v59 = vld [vmem:[%s3138_s2 + $0x5e8] sm:$0xff]  ;;  %v1683_v63 = vld [vmem:[%s3138_s2 + $0x5d8] sm:$0xff] }
 0x161   :  { %1228 = vmatpush1.msra.mxu1 %v1650_v3  ;;  %v913_v11 = vsel %vm243_vm2, %v908_v38, %v912_v7  ;;  %1109 = vmatprep.mubr.f32.mxu0 %v2831_v44  ;;  %v917_v61 = vsel %vm243_vm2, %v912_v7, %v916_v12  ;;  %v1637_v38 = vld [vmem:[%s3138_s2 + $0x468] sm:$0xff]  ;;  %v1682_v1 = vld [vmem:[%s3138_s2 + $0x5d0] sm:$0xff]  ;;  %v1680_v3 = vld [vmem:[%s3138_s2 + $0x5c0] sm:$0xff] }
 0x162   :  { %1229 = vmatprep.subr.mxu1 %v1649_v6  ;;  %1002 = vmatprep.mubr.f32.mxu1 %v913_v11  ;;  %v1681_v2 = vld [vmem:[%s3138_s2 + $0x5c8] sm:$0xff]  ;;  %v1679_v4 = vld [vmem:[%s3138_s2 + $0x5b8] sm:$0xff]  ;;  %v1678_v6 = vld [vmem:[%s3138_s2 + $0x5b0] sm:$0xff] }
 0x163   :  { %1230 = vmatpush1.msra.mxu1 %v1648_v8  ;;  %v1677_v42 = vld [vmem:[%s3138_s2 + $0x5a8] sm:$0xff]  ;;  %v1676_v7 = vld [vmem:[%s3138_s2 + $0x5a0] sm:$0xff]  ;;  %v1675_v8 = vld [vmem:[%s3138_s2 + $0x598] sm:$0xff] }
 0x164   :  { %1003 = vmatmul.mubr.f32.gmra.mxu1 %v911_v13  ;;  %1231 = vmatprep.subr.mxu1 %v1647_v9  ;;  %v1674_v9 = vld [vmem:[%s3138_s2 + $0x590] sm:$0xff]  ;;  %v1673_v11 = vld [vmem:[%s3138_s2 + $0x588] sm:$0xff]  ;;  %v1671_v13 = vld [vmem:[%s3138_s2 + $0x578] sm:$0xff] }
 0x165   :  { %1110 = vmatmul.mubr.f32.gmra.mxu0 %v2824_v55  ;;  %1008 = vmatprep.mubr.f32.mxu1 %v917_v61  ;;  %v827_v15 = vld [vmem:[#allocation2 + $0x40] sm:$0x7]  ;;  %v1669_v61 = vld [vmem:[%s3138_s2 + $0x568] sm:$0xff] }
 0x166   :  { %1232 = vmatpush1.msra.mxu1 %v1646_v14  ;;  %v918_v21 = vrot.slane %v827_v15, 1  ;;  %v759_v23 = vld [vmem:[#allocation2 + $0x40] sm:$0x3]  ;;  %v1670_v14 = vld [vmem:[%s3138_s2 + $0x570] sm:$0xff]  ;;  %v1665_v15 = vld [vmem:[%s3138_s2 + $0x548] sm:$0xff] }
 0x167   :  { %1233 = vmatprep.subr.mxu1 %v1645_v45  ;;  %v760_v18 = vld [vmem:[#allocation2 + $0x48] sm:$0x3]  ;;  %v1668_v45 = vld [vmem:[%s3138_s2 + $0x560] sm:$0xff] }
 0x168   :  { %1009 = vmatmul.mubr.f32.gmra.mxu1 %v915_v16  ;;  %v828_v20 = vld [vmem:[#allocation2 + $0x48] sm:$0x7]  ;;  %1115 = vmatprep.mubr.f32.mxu0 %v760_v18  ;;  %v919_v30 = vsel %vm243_vm2, %v914_v40, %v918_v21  ;;  %v1667_v40 = vld [vmem:[%s3138_s2 + $0x558] sm:$0xff]  ;;  %v1664_v16 = vld [vmem:[%s3138_s2 + $0x540] sm:$0xff] }
 0x169   :  { %1234 = vmatpush1.msra.mxu1 %v1644_v10  ;;  %v920_v24 = vrot.slane %v828_v20, 1  ;;  %1116 = vmatmul.mubr.f32.gmra.mxu0 %v759_v23  ;;  %v1666_v10 = vld [vmem:[%s3138_s2 + $0x550] sm:$0xff]  ;;  %v1661_v20 = vld [vmem:[%s3138_s2 + $0x528] sm:$0xff]  ;;  %v1659_v23 = vld [vmem:[%s3138_s2 + $0x518] sm:$0xff] }
 0x16a   :  { %1235 = vmatprep.subr.mxu1 %v1643_v17  ;;  %v1663_v17 = vld [vmem:[%s3138_s2 + $0x538] sm:$0xff]  ;;  %v1662_v18 = vld [vmem:[%s3138_s2 + $0x530] sm:$0xff] }
 0x16b   :  { %v921_v27 = vsel %vm243_vm2, %v916_v12, %v920_v24  ;;  %1236 = vmatpush1.msra.mxu1 %v1642_v22  ;;  %v1672_v12 = vld [vmem:[%s3138_s2 + $0x580] sm:$0xff] }
 0x16c   :  { %1014 = vmatprep.mubr.f32.mxu1 %v921_v27  ;;  %1237 = vmatprep.subr.mxu1 %v1641_v25  ;;  %v1122_v22 = vld [vmem:[#allocation2] sm:$0xfc]  ;;  %v1657_v25 = vld [vmem:[%s3138_s2 + $0x508] sm:$0xff]  ;;  %v1203_v27 = vrot.slane %v2846_v5, 2 }
 0x16d   :  { %1015 = vmatmul.mubr.f32.gmra.mxu1 %v919_v30  ;;  %v1195_v26 = vrot.slane %v1122_v22, 2  ;;  %v1196_v30 = vrot.slane %v2806_v35, 2  ;;  %v1125_v5 = vld [vmem:[#allocation2 + $0x48] sm:$0xf] }
 0x16e   :  { %1020 = vmatprep.mubr.f32.mxu1 %v920_v24  ;;  %1238 = vmatpush1.msra.mxu1 %v1640_v28  ;;  %v1658_v24 = vld [vmem:[%s3138_s2 + $0x510] sm:$0xff]  ;;  %v1656_v28 = vld [vmem:[%s3138_s2 + $0x500] sm:$0xff]  ;;  %v1204_v36 = vsel %vm535_vm4, %v1199_v41, %v1203_v27 }
 0x16f   :  { %1239 = vmatprep.subr.mxu1 %v1639_v31  ;;  %v1201_v31 = vrot.slane %v2837_v62, 2  ;;  %v1205_v62 = vrot.slane %v2824_v55, 2 }
 0x170   :  { %1240 = vmatpush1.msra.mxu1 %v1638_v33  ;;  %v1197_v33 = vsel %vm535_vm4, %v1195_v26, %v1196_v30 }
 0x171   :  { %1021 = vmatmul.mubr.f32.gmra.mxu1 %v918_v21  ;;  %1241 = vmatprep.subr.mxu1 %v1637_v38  ;;  %v1660_v21 = vld [vmem:[%s3138_s2 + $0x520] sm:$0xff]  ;;  %v1207_v38 = vrot.slane %v2831_v44, 2 }
 0x172   :  { %1287 = vmatprep.mubr.f32.mxu1 %v1200_v46  ;;  %1242 = vmatpush1.msra.mxu1 %v1636_v0  ;;  %v1202_v0 = vsel %vm535_vm4, %v1196_v30, %v1201_v31  ;;  %v1124_v46 = vld [vmem:[#allocation2 + $0x40] sm:$0xf] }
 0x173   :  { %1243 = vmatprep.subr.mxu1 %v1635_v43  ;;  %v1208_v35 = vsel %vm535_vm4, %v1203_v27, %v1207_v38  ;;  %v1211_v43 = vrot.slane %v1125_v5, 2  ;;  %v1347_v27 = vld [vmem:[%s3137_s0 + $0x18] sm:$0xff] }
 0x174   :  { %1244 = vmatpush1.msra.mxu1 %v1634_v47  ;;  %v1206_v47 = vsel %vm535_vm4, %v1201_v31, %v1205_v62 }
 0x175   :  { %1245 = vmatprep.subr.mxu1 %v1633_v48  ;;  %v1209_v48 = vrot.slane %v1124_v46, 2  ;;  %v1212_v19 = vsel %vm535_vm4, %v1207_v38, %v1211_v43  ;;  %v1691_v38 = vld [vmem:[%s3137_s0 + $0x38] sm:$0xff] }
 0x176   :  { %1246 = vmatpush1.msra.mxu1 %v1632_v37 }
 0x177   :  { %1247 = vmatprep.subr.mxu1 %v1631_v49  ;;  %v1210_v41 = vsel %vm535_vm4, %v1205_v62, %v1209_v48 }
 0x178   :  { %1248 = vmatpush1.msra.mxu1 %v1630_v50 }
 0x179   :  { %1249 = vmatprep.subr.mxu1 %v1629_v51 }
 0x17a   :  { %1250 = vmatpush1.msra.mxu1 %v1628_v52 }
 0x17b   :  { %1251 = vmatprep.subr.mxu1 %v1627_v53 }
 0x17c   :  { %1252 = vmatpush1.msra.mxu1 %v1626_v54 }
 0x17d   :  { %1253 = vmatprep.subr.mxu1 %v1625_v39 }
 0x17e   :  { %1254 = vmatpush1.msra.mxu1 %v1624_v56 }
 0x17f   :  { %1255 = vmatprep.subr.mxu1 %v1687_v57 }
 0x180   :  { %1256 = vmatpush2.msra.mxu1 %v1686_v58 }
 0x181   :  { %1257 = vmatprep.subr.mxu1 %v1685_v59 }
 0x182   :  { %1258 = vmatpush2.msra.mxu1 %v1684_v60  ;;  %v1328_v60 = vld [vmem:[%s3140_s4] sm:$0x3] }
 0x183   :  { %1259 = vmatprep.subr.mxu1 %v1683_v63 }
 0x184   :  { %1260 = vmatpush2.msra.mxu1 %v1682_v1 }
 0x185   :  { %1261 = vmatprep.subr.mxu1 %v1681_v2  ;;  %v3064_v2 = vrot.slane %v1328_v60, %v673_v32  ;;  %v1345_v32 = vld [vmem:[%s3137_s0 + $0x8] sm:$0xff] }
 0x186   :  { %1262 = vmatpush2.msra.mxu1 %v1680_v3 }
 0x187   :  { %1263 = vmatprep.subr.mxu1 %v1679_v4 }
 0x188   :  { %1264 = vmatpush2.msra.mxu1 %v1678_v6 }
 0x189   :  { %1265 = vmatprep.subr.mxu1 %v1677_v42 }
 0x18a   :  { %1266 = vmatpush2.msra.mxu1 %v1676_v7  ;;  %v3068_v7 = vrot.slane %v1328_v60, %v677_v34 }
 0x18b   :  { %1267 = vmatprep.subr.mxu1 %v1675_v8  ;;  %v1344_v8 = vld [vmem:[%s3137_s0] sm:$0xff] }
 0x18c   :  { %1268 = vmatpush2.msra.mxu1 %v1674_v9 }
 0x18d   :  { %1269 = vmatprep.subr.mxu1 %v1673_v11 }
 0x18e   :  { %1270 = vmatpush2.msra.mxu1 %v1672_v12 }
 0x18f   :  { %1271 = vmatprep.subr.mxu1 %v1671_v13 }
 0x190   :  { %1272 = vmatpush2.msra.mxu1 %v1670_v14 }
 0x191   :  { %1273 = vmatprep.subr.mxu1 %v1669_v61 }
 0x192   :  { %1274 = vmatpush2.msra.mxu1 %v1668_v45 }
 0x193   :  { %1275 = vmatprep.subr.mxu1 %v1667_v40 }
 0x194   :  { %1276 = vmatpush2.msra.mxu1 %v1666_v10  ;;  %v1688_v10 = vld [vmem:[%s3137_s0 + $0x20] sm:$0xff] }
 0x195   :  { %1277 = vmatprep.subr.mxu1 %v1665_v15  ;;  %v1375_v30 = vrot.slane %v1688_v10, 6 }
 0x196   :  { %1278 = vmatpush2.msra.mxu1 %v1664_v16  ;;  %v1346_v16 = vld [vmem:[%s3137_s0 + $0x10] sm:$0xff] }
 0x197   :  { %1279 = vmatprep.subr.mxu1 %v1663_v17 }
 0x198   :  { %1280 = vmatpush2.msra.mxu1 %v1662_v18 }
 0x199   :  { %1281 = vmatprep.subr.mxu1 %v1661_v20 }
 0x19a   :  { %1282 = vmatpush2.msra.mxu1 %v1660_v21 }
 0x19b   :  { %1283 = vmatprep.subr.mxu1 %v1659_v23  ;;  %v1689_v23 = vld [vmem:[%s3137_s0 + $0x28] sm:$0xff] }
 0x19c   :  { %1284 = vmatpush2.msra.mxu1 %v1658_v24  ;;  %v1690_v24 = vld [vmem:[%s3137_s0 + $0x30] sm:$0xff] }
 0x19d   :  { %1285 = vmatprep.subr.mxu1 %v1657_v25  ;;  %v1377_v46 = vrot.slane %v1690_v24, 6 }
 0x19e   :  { %1286 = vmatpush2.msra.mxu1 %v1656_v28 }
 0x19f   :  { %1288 = vmatmul.mubr.f32.vlgmr.msra.gmra.mxu1 %v1197_v33 }
 0x1a0   :  { %1293 = vmatprep.mubr.f32.mxu1 %v1204_v36 }
 0x1a3   :  { %1294 = vmatmul.mubr.f32.gmra.mxu1 %v1202_v0 }
 0x1a4   :  { %1299 = vmatprep.mubr.f32.mxu1 %v1208_v35 }
 0x1a7   :  { %1300 = vmatmul.mubr.f32.gmra.mxu1 %v1206_v47 }
 0x1a8   :  { %1305 = vmatprep.mubr.f32.mxu1 %v1212_v19 }
 0x1ab   :  { %1306 = vmatmul.mubr.f32.gmra.mxu1 %v1210_v41 }
 0x1ac   :  { %1311 = vmatprep.mubr.f32.mxu1 %v1211_v43  ;;  %v1376_v43 = vrot.slane %v1689_v23, 6 }
 0x1af   :  { %1312 = vmatmul.mubr.f32.gmra.mxu1 %v1209_v48 }
 0x218   :  { %v1093_v52 = vpop.f32.mrf.mxu0 }
 0x21a   :  { %v1095_v53 = vpop.f32.mrf.mxu0 }
 0x21c   :  { %v998_v44 = vpop.f32.mrf.mxu1  ;;  %v1099_v39 = vpop.f32.mrf.mxu0 }
 0x21d   :  { %v1094_v1 = vadd.f32 %v1093_v52, %v998_v44 }
 0x21e   :  { %v1000_v37 = vpop.f32.mrf.mxu1  ;;  %v1101_v57 = vpop.f32.mrf.mxu0 }
 0x21f   :  { %v1096_v6 = vadd.f32 %v1095_v53, %v1000_v37  ;;  %v1378_v53 = vsel %vm1374_vm5, %v1375_v30, %v1377_v46 }
 0x220   :  { %v1105_v59 = vpop.f32.mrf.mxu0 }
 0x222   :  { %v1107_v3 = vpop.f32.mrf.mxu0 }
 0x224   :  { %v1004_v49 = vpop.f32.mrf.mxu1 }
 0x225   :  { %v1100_v11 = vadd.f32 %v1099_v39, %v1004_v49  ;;  %v1111_v14 = vpop.f32.mrf.mxu0  ;;  %v1379_v49 = vrot.slane %v1691_v38, 6 }
 0x226   :  { %v1006_v50 = vpop.f32.mrf.mxu1 }
 0x227   :  { %v1102_v45 = vadd.f32 %v1101_v57, %v1006_v50  ;;  %v1113_v25 = vpop.f32.mrf.mxu0 }
 0x228   :  { %v1010_v51 = vpop.f32.mrf.mxu1 }
 0x229   :  { %v1106_v15 = vadd.f32 %v1105_v59, %v1010_v51  ;;  %v1117_v41 = vpop.f32.mrf.mxu0 }
 0x22a   :  { %v1012_v55 = vpop.f32.mrf.mxu1 }
 0x22b   :  { %v1108_v26 = vadd.f32 %v1107_v3, %v1012_v55  ;;  %v1119_v59 = vpop.f32.mrf.mxu0 }
 0x22d   :  { %v1016_v54 = vpop.f32.mrf.mxu1 }
 0x22e   :  { %v1112_v0 = vadd.f32 %v1111_v14, %v1016_v54 }
 0x22f   :  { %v1018_v56 = vpop.f32.mrf.mxu1 }
 0x230   :  { %v1114_v44 = vadd.f32 %v1113_v25, %v1018_v56 }
 0x231   :  { %v3055_v58 = vpop.f32.mrf.mxu1 }
 0x232   :  { %v1118_v60 = vadd.f32 %v1117_v41, %v3055_v58 }
 0x233   :  { %v3060_v63 = vpop.f32.mrf.mxu1 }
 0x25f   :  { %v1289_v4 = vpop.f32.mrf.mxu1 }
 0x260   :  { %v1318_v42 = vadd.f32 %v1289_v4, %v1094_v1  ;;  %v1380_v1 = vsel %vm1374_vm5, %v1376_v43, %v1379_v49  ;;  %v1120_v4 = vadd.f32 %v1119_v59, %v3060_v63 }
 0x261   :  { %v1291_v9 = vpop.f32.mrf.mxu1 }
 0x262   :  { %v1340_v12 = vadd.f32 %v3064_v2, %v1318_v42  ;;  %v1319_v13 = vadd.f32 %v1291_v9, %v1096_v6 }
 0x263   :  { %v1295_v61 = vpop.f32.mrf.mxu1 }
 0x264   :  { %v1348_v40 = vadd.f32 %v1344_v8, %v1340_v12  ;;  %v1341_v29 = vadd.f32 %v3068_v7, %v1319_v13  ;;  %v1320_v34 = vadd.f32 %v1295_v61, %v1100_v11 }
 0x265   :  { %v1297_v17 = vpop.f32.mrf.mxu1 }
 0x266   :  { %v1352_v18 = vmax.f32 %v1348_v40, 0.0  ;;  %v1349_v20 = vadd.f32 %v1345_v32, %v1341_v29  ;;  %v1342_v21 = vadd.f32 %v3064_v2, %v1320_v34  ;;  %v1321_v22 = vadd.f32 %v1297_v17, %v1102_v45 }
 0x267   :  { %v1301_v28 = vpop.f32.mrf.mxu1 }
 0x268   :  { %1356 = vst [vmem:[%s3141_s5] sm:$0xff] %v1352_v18  ;;  %v1353_v31 = vmax.f32 %v1349_v20, 0.0  ;;  %v1350_v33 = vadd.f32 %v1346_v16, %v1342_v21  ;;  %v1343_v36 = vadd.f32 %v3068_v7, %v1321_v22  ;;  %v1322_v5 = vadd.f32 %v1301_v28, %v1106_v15 }
 0x269   :  { %v1303_v35 = vpop.f32.mrf.mxu1 }
 0x26a   :  { %1357 = vst [vmem:[%s3141_s5 + $0x8] sm:$0xff] %v1353_v31  ;;  %v1354_v62 = vmax.f32 %v1350_v33, 0.0  ;;  %v1351_v47 = vadd.f32 %v1347_v27, %v1343_v36  ;;  %v1360_v48 = vadd.f32 %v3064_v2, %v1322_v5  ;;  %v1323_v19 = vadd.f32 %v1303_v35, %v1108_v26 }
 0x26b   :  { %v1307_v37 = vpop.f32.mrf.mxu1 }
 0x26c   :  { %1358 = vst [vmem:[%s3141_s5 + $0x10] sm:$0xff] %v1354_v62  ;;  %v1355_v50 = vmax.f32 %v1351_v47, 0.0  ;;  %v1387_v51 = vadd.f32 %v1375_v30, %v1360_v48  ;;  %v1361_v52 = vadd.f32 %v3068_v7, %v1323_v19  ;;  %v1324_v55 = vadd.f32 %v1307_v37, %v1112_v0 }
 0x26d   :  { %v1309_v54 = vpop.f32.mrf.mxu1 }
 0x26e   :  { %1359 = vst [vmem:[%s3141_s5 + $0x18] sm:$0xff] %v1355_v50  ;;  %v1388_v39 = vadd.f32 %v1376_v43, %v1361_v52  ;;  %v1362_v56 = vadd.f32 %v3064_v2, %v1324_v55  ;;  %v1325_v57 = vadd.f32 %v1309_v54, %v1114_v44  ;;  %v1393_v6 = vmax.f32 %v1387_v51, 0.0 }
 0x26f   :  { %v1313_v3 = vpop.f32.mrf.mxu1 }
 0x270   :  { %v1389_v42 = vadd.f32 %v1378_v53, %v1362_v56  ;;  %v1363_v8 = vadd.f32 %v3068_v7, %v1325_v57  ;;  %v1326_v9 = vadd.f32 %v1313_v3, %v1118_v60  ;;  %v1394_v12 = vmax.f32 %v1388_v39, 0.0 }
 0x271   :  { %v1315_v11 = vpop.f32.mrf.mxu1  ;;  %v1405_v45 = vrot.slane %v1393_v6, 2 }
 0x272   :  { %v1395_v13 = vmax.f32 %v1389_v42, 0.0  ;;  %v1390_v14 = vadd.f32 %v1380_v1, %v1363_v8  ;;  %v1327_v32 = vadd.f32 %v1315_v11, %v1120_v4  ;;  %v1364_v61 = vadd.f32 %v3064_v2, %v1326_v9 }
 0x273   :  { %v1408_v10 = vrot.slane %v1394_v12, 2 }
 0x274   :  { %v1406_v40 = vrot.slane %v1395_v13, 2  ;;  %v1396_v58 = vmax.f32 %v1390_v14, 0.0  ;;  %v1365_v29 = vadd.f32 %v3068_v7, %v1327_v32  ;;  %v1391_v34 = vadd.f32 %v1377_v46, %v1364_v61 }
 0x276   :  { %v1407_v63 = vsel %vm535_vm4, %v1405_v45, %v1406_v40  ;;  %v1409_v15 = vrot.slane %v1396_v58, 2  ;;  %v1392_v16 = vadd.f32 %v1379_v49, %v1365_v29  ;;  %v1397_v17 = vmax.f32 %v1391_v34, 0.0 }
 0x277   :  { %1692 = vst [vmem:[%s3141_s5 + $0x20] sm:$0xff] %v1407_v63 }
 0x278   :  { %v1410_v18 = vsel %vm535_vm4, %v1408_v10, %v1409_v15  ;;  %v1398_v20 = vmax.f32 %v1392_v16, 0.0  ;;  %v1411_v2 = vrot.slane %v1397_v17, 2 }
 0x279   :  { %1693 = vst [vmem:[%s3141_s5 + $0x28] sm:$0xff] %v1410_v18 }
 0x27a   :  { %v1413_v7 = vrot.slane %v1398_v20, 2  ;;  %v1412_v21 = vsel %vm535_vm4, %v1406_v40, %v1411_v2 }
 0x27b   :  { %1694 = vst [vmem:[%s3141_s5 + $0x30] sm:$0xff] %v1412_v21 }
 0x27c   :  { %v1414_v22 = vsel %vm535_vm4, %v1409_v15, %v1413_v7 }
 0x27d   :  { %1695 = vst [vmem:[%s3141_s5 + $0x38] sm:$0xff] %v1414_v22 }

</bundles_post_ra>
